<compile_context>
chip_gen: v5e
topology: v5e:2x2
jax: 0.10.0
libtpu: 0.0.40
codegen_flags: <defaults>
</compile_context>

<pallas_src>
import functools
import math

import jax
import jax.numpy as jnp
from jax.experimental import pallas as pl
from jax.experimental.pallas import tpu as pltpu

LEAKY_SLOPE = 0.2
BN_EPS = 1e-5
NEG_INF = -1e30


def _full_spec(shape):
    nd = len(shape)
    return pl.BlockSpec(shape, lambda i, _n=nd: (0,) * _n)


def _pad8(w):
    return ((w + 7) // 8) * 8


# ----------------------------------------------------------------------------
# Fully fused forward kernel.
#   node_ref : (N, W) slab = [feat | mask | ppmi | per-layer aux fields]
#   refs     : (w_cat_0, ..., w_cat_{L-1}, out_ref, hbuf_scratch)
#   cfgs[i]  : (out_feats, attn_off, eps_src_off, eps_dst_off, affine_off)  (static ints)
# ----------------------------------------------------------------------------
def _vae_fused_kernel(node_ref, *refs, cfgs, n, heads, in_feats, mxu_bf16):
    nl = len(cfgs)
    w_refs = refs[:nl]
    out_ref = refs[nl]
    hbuf = refs[nl + 1]

    feat = node_ref[:, 0:in_feats]
    mask = node_ref[:, in_feats:in_feats + n]
    ppmi = node_ref[:, in_feats + n:in_feats + 2 * n]

    # One-time fused edge weight: w = clamp(log(clamp(log(ppmi), 1)), 1) on edges, 0 off.
    edge = mask > 0.0
    ppmi_safe = jnp.where(edge, ppmi, 1.0)
    wt = jnp.where(edge,
                   jnp.maximum(jnp.log(jnp.maximum(jnp.log(ppmi_safe), 1.0)), 1.0),
                   0.0)

    h_val = feat            # inter-layer activation stays VMEM-resident (value / scratch)
    in_w = in_feats
    for li in range(nl):
        out_f, attn_off, eps_s_off, eps_d_off, affine_off = cfgs[li]
        hf = heads * out_f
        is_last = li == nl - 1

        # fc + linear share one MXU matmul (weights concatenated along the output axis).
        wcat = w_refs[li][...]
        feat_cat = jnp.dot(h_val.astype(wcat.dtype), wcat,
                           preferred_element_type=jnp.float32)          # (N, 2*H*F)
        feat_src = feat_cat[:, :hf]
        lin = feat_cat[:, hf:]

        # All per-head mu/lam projections as one block-diagonal MXU dot:
        # columns [0:H]=mu_src, [H:2H]=mu_dst, [2H:3H]=lam_src (== lam_dst, reference bug).
        attn = node_ref[0:hf, attn_off:attn_off + 3 * heads]             # (H*F, 3H)
        proj = jnp.dot(feat_src, attn, preferred_element_type=jnp.float32)
        mu_src = proj[:, 0:heads]
        mu_dst = proj[:, heads:2 * heads]
        lam = proj[:, 2 * heads:3 * heads]

        std = jnp.exp(0.5 * lam)                       # same std for src and dst
        eps_s = node_ref[:, eps_s_off:eps_s_off + heads]
        eps_d = node_ref[:, eps_d_off:eps_d_off + heads]
        z_src = eps_s * std + mu_src                   # (N, H)
        z_dst = eps_d * std + mu_dst
        z_src_t = z_src.T                              # (H, N)

        fs_mxu = feat_src.astype(jnp.bfloat16) if mxu_bf16 else feat_src
        acc = None
        for hh in range(heads):
            # dense [dst, src] scores; self-loops guarantee each row has >= 1 edge
            e = z_dst[:, hh:hh + 1] + z_src_t[hh:hh + 1, :]              # u_add_v
            e = jnp.where(e >= 0.0, e, LEAKY_SLOPE * e)                  # LeakyReLU(0.2)
            s = jnp.where(edge, e * wt, NEG_INF)
            p = jnp.exp(s - jnp.max(s, axis=1, keepdims=True))
            a = p * pl.reciprocal(jnp.sum(p, axis=1, keepdims=True), approx=True)
            if mxu_bf16:
                a = a.astype(jnp.bfloat16)
            d = jnp.dot(a, fs_mxu[:, hh * out_f:(hh + 1) * out_f],
                        preferred_element_type=jnp.float32)             # (N, F)
            x = d + lin[:, hh * out_f:(hh + 1) * out_f]

            if is_last:
                acc = x if acc is None else acc + x    # fused head-mean accumulation
            else:
                if in_w == hf:                         # residual == this layer's own input
                    x = x + h_val[:, hh * out_f:(hh + 1) * out_f]
                # BatchNorm1d (train mode: batch stats, biased var) is per-column, so
                # evaluating it per head block is exact.
                mean = jnp.mean(x, axis=0, keepdims=True)
                var = jnp.mean(jnp.square(x - mean), axis=0, keepdims=True)
                gamma = node_ref[0:1, affine_off + hh * out_f:affine_off + (hh + 1) * out_f]
                beta = node_ref[1:2, affine_off + hh * out_f:affine_off + (hh + 1) * out_f]
                xn = (x - mean) * jax.lax.rsqrt(var + BN_EPS)
                hbuf[:, hh * out_f:(hh + 1) * out_f] = jnp.maximum(xn * gamma + beta, 0.0)

        if is_last:
            bias = node_ref[0:1, affine_off:affine_off + out_f]
            out_ref[:, 0:out_f] = acc * (1.0 / heads) + bias
            out_ref[:, out_f:out_f + heads] = mu_src + mu_dst            # mu
            out_ref[:, out_f + heads:out_f + 2 * heads] = 2.0 * lam      # log_var
        else:
            h_val = hbuf[:, 0:hf]                      # next layer reads the scratch
            in_w = hf


# ----------------------------------------------------------------------------
# Host-side input packing: one lane-dense node slab + per-layer weight slabs.
# ----------------------------------------------------------------------------
def pack_vae_inputs(feat, mask_t, ppmi_t, layer_params, eps, heads):
    n = feat.shape[0]
    pieces = [feat, mask_t, ppmi_t]
    col = feat.shape[1] + 2 * n
    pad = _pad8(col) - col
    if pad:
        pieces.append(jnp.zeros((n, pad), jnp.float32))
        col += pad

    cfgs = []
    w_cats = []
    nl = len(layer_params)
    for i, lp in enumerate(layer_params):
        out_f = lp["out_feats"]
        hf = heads * out_f
        assert hf <= n, "attn packing needs heads*out_feats <= n_nodes"
        is_last = i == nl - 1
        w_cats.append(lp["w_cat"])

        def add_field(mat):
            nonlocal col
            rows, width = mat.shape
            buf = jnp.zeros((n, _pad8(width)), jnp.float32)
            buf = buf.at[:rows, :width].set(mat)
            pieces.append(buf)
            off = col
            col += buf.shape[1]
            return off

        attn_off = add_field(lp["attn_pack"])                         # (H*F, 3H)
        eps_s_off = add_field(eps["src"][i])                          # (N, H)
        eps_d_off = add_field(eps["dst"][i])                          # (N, H)
        if is_last:
            affine_off = add_field(lp["bias"].reshape(1, -1))         # (1, C)
        else:
            affine_off = add_field(jnp.stack([lp["gamma"], lp["beta"]], axis=0))
        cfgs.append((out_f, attn_off, eps_s_off, eps_d_off, affine_off))

    return jnp.concatenate(pieces, axis=1), w_cats, tuple(cfgs)


def vae_forward(node_slab, w_cats, cfgs, *, n, heads, in_feats, n_classes, mxu_bf16=True):
    nl = len(cfgs)
    hidden_ws = [heads * cfgs[i][0] for i in range(nl - 1)]
    hbuf_w = max(hidden_ws) if hidden_ws else 8
    out_w = n_classes + 2 * heads
    kernel = functools.partial(_vae_fused_kernel, cfgs=tuple(cfgs), n=n, heads=heads,
                               in_feats=in_feats, mxu_bf16=mxu_bf16)
    args = (node_slab, *w_cats)
    out = pl.pallas_call(
        kernel,
        out_shape=jax.ShapeDtypeStruct((n, out_w), jnp.float32),
        grid=(1,),
        in_specs=[_full_spec(a.shape) for a in args],
        out_specs=_full_spec((n, out_w)),
        scratch_shapes=[pltpu.VMEM((n, hbuf_w), jnp.float32)],
        compiler_params=pltpu.CompilerParams(dimension_semantics=("arbitrary",)),
    )(*args)
    logits = out[:, :n_classes]
    mu = out[:, n_classes:n_classes + heads][:, :, None]
    log_var = out[:, n_classes + heads:n_classes + 2 * heads][:, :, None]
    return logits, mu, log_var


# ----------------------------------------------------------------------------
# Pure-JAX reference (exact f32) for correctness checking.
# ----------------------------------------------------------------------------
def vae_reference(layer_params, feat, mask_t, ppmi_t, eps, heads):
    n = feat.shape[0]
    edge = mask_t > 0.0
    ppmi_safe = jnp.where(edge, ppmi_t, 1.0)
    wt = jnp.where(edge, jnp.maximum(jnp.log(jnp.maximum(jnp.log(ppmi_safe), 1.0)), 1.0), 0.0)
    h = feat
    h_last = feat
    nl = len(layer_params)
    out = mu = log_var = None
    for i, lp in enumerate(layer_params):
        out_f = lp["out_feats"]
        hf = heads * out_f
        fs = h @ lp["fc_w"]
        lin = h @ lp["lin_w"]
        fs3 = fs.reshape(n, heads, out_f)
        mu_src = jnp.einsum("nhf,hf->nh", fs3, lp["mu_src"])
        mu_dst = jnp.einsum("nhf,hf->nh", fs3, lp["mu_dst"])
        lam = jnp.einsum("nhf,hf->nh", fs3, lp["lam_src"])
        std = jnp.exp(0.5 * lam)
        z_src = eps["src"][i] * std + mu_src
        z_dst = eps["dst"][i] * std + mu_dst
        e = z_dst[:, None, :] + z_src[None, :, :]                    # (dst, src, H)
        e = jnp.where(e >= 0.0, e, LEAKY_SLOPE * e)
        s = jnp.where(edge[:, :, None], e * wt[:, :, None], -jnp.inf)
        a = jax.nn.softmax(s, axis=1)
        conv = jnp.einsum("dsh,shf->dhf", a, fs3)
        x = conv + lin.reshape(n, heads, out_f)
        if i < nl - 1:
            x = x.reshape(n, hf)
            if h_last.shape[-1] == hf:
                x = x + h_last
            mean = jnp.mean(x, axis=0, keepdims=True)
            var = jnp.mean(jnp.square(x - mean), axis=0, keepdims=True)
            x = (x - mean) / jnp.sqrt(var + BN_EPS) * lp["gamma"][None, :] + lp["beta"][None, :]
            h = jnp.maximum(x, 0.0)
            h_last = h
        else:
            out = x.mean(axis=1) + lp["bias"][None, :]
            mu = (mu_src + mu_dst)[:, :, None]
            log_var = (2.0 * lam)[:, :, None]
    return out, mu, log_var


# ----------------------------------------------------------------------------
# Deterministic parameter / input construction and driver
# ----------------------------------------------------------------------------
def _xavier(key, shape, gain):
    fan_in, fan_out = shape
    std = gain * math.sqrt(2.0 / (fan_in + fan_out))
    return (std * jax.random.normal(key, shape)).astype(jnp.float32)


def _pack_attn(mu_s, mu_d, lam_s):
    """Block-diagonal packing so feat_src @ P gives [mu_src | mu_dst | lam] per head."""
    heads, feats = mu_s.shape
    p = jnp.zeros((heads * feats, 3 * heads), jnp.float32)
    for h in range(heads):
        rows = slice(h * feats, (h + 1) * feats)
        p = p.at[rows, h].set(mu_s[h])
        p = p.at[rows, heads + h].set(mu_d[h])
        p = p.at[rows, 2 * heads + h].set(lam_s[h])
    return p


if __name__ == "__main__":
    N_NODES, IN_FEATS, N_HIDDEN, N_CLASSES, N_LAYERS, N_HEADS = 32, 32, 16, 8, 2, 2
    MXU_BF16 = True         # bf16 MXU operands, f32 accumulation (set False for f32 dots)

    key = jax.random.PRNGKey(0)
    ki = iter(jax.random.split(key, 32))
    gain = math.sqrt(2.0)

    layer_params = []
    for i in range(N_LAYERS):
        in_hidden = N_HEADS * N_HIDDEN if i > 0 else IN_FEATS
        out_hidden = N_HIDDEN if i < N_LAYERS - 1 else N_CLASSES
        fc_w = _xavier(next(ki), (in_hidden, N_HEADS * out_hidden), gain)
        lin_w = _xavier(next(ki), (in_hidden, N_HEADS * out_hidden), 1.0)
        mu_s = _xavier(next(ki), (N_HEADS, out_hidden), gain / 30)
        mu_d = _xavier(next(ki), (N_HEADS, out_hidden), gain / 30)
        lam_s = _xavier(next(ki), (N_HEADS, out_hidden), gain / 30)
        lp = {
            "out_feats": out_hidden, "fc_w": fc_w, "lin_w": lin_w,
            "mu_src": mu_s, "mu_dst": mu_d, "lam_src": lam_s,
            "attn_pack": _pack_attn(mu_s, mu_d, lam_s),
            "w_cat": jnp.concatenate([fc_w, lin_w], axis=1).astype(
                jnp.bfloat16 if MXU_BF16 else jnp.float32),
        }
        if i < N_LAYERS - 1:
            lp["gamma"] = jnp.ones((N_HEADS * out_hidden,), jnp.float32)
            lp["beta"] = jnp.zeros((N_HEADS * out_hidden,), jnp.float32)
        else:
            lp["bias"] = jnp.zeros((N_CLASSES,), jnp.float32)       # Bias module, zero-init
        layer_params.append(lp)

    # Synthetic graph: dense adjacency [dst, src] with self loops (in-degree >= 1),
    # positive ppmi edge weights.
    mask_t = (jax.random.uniform(next(ki), (N_NODES, N_NODES)) < 0.3).astype(jnp.float32)
    mask_t = jnp.maximum(mask_t, jnp.eye(N_NODES, dtype=jnp.float32))
    ppmi_t = mask_t * jax.random.uniform(next(ki), (N_NODES, N_NODES), minval=1.0, maxval=25.0)
    feat = jax.random.normal(next(ki), (N_NODES, IN_FEATS), jnp.float32)

    # Gaussian noise for reparameterize (one src + one dst draw per layer), (N, H).
    eps = {"src": [], "dst": []}
    for i in range(N_LAYERS):
        eps["src"].append(jax.random.normal(next(ki), (N_NODES, N_HEADS), jnp.float32))
        eps["dst"].append(jax.random.normal(next(ki), (N_NODES, N_HEADS), jnp.float32))

    node_slab, w_cats, cfgs = pack_vae_inputs(feat, mask_t, ppmi_t, layer_params, eps, N_HEADS)

    out, mu, log_var = vae_forward(node_slab, w_cats, cfgs, n=N_NODES, heads=N_HEADS,
                                   in_feats=IN_FEATS, n_classes=N_CLASSES, mxu_bf16=MXU_BF16)
    jax.block_until_ready(out)
    jax.block_until_ready(mu)
    jax.block_until_ready(log_var)

    ref_out, ref_mu, ref_lv = vae_reference(layer_params, feat, mask_t, ppmi_t, eps, N_HEADS)

    assert out.shape == (N_NODES, N_CLASSES)
    assert mu.shape == (N_NODES, N_HEADS, 1)
    assert log_var.shape == (N_NODES, N_HEADS, 1)
    assert bool(jnp.all(jnp.isfinite(out)))
    assert bool(jnp.all(jnp.isfinite(mu)))
    assert bool(jnp.all(jnp.isfinite(log_var)))
    tol = 0.1 if MXU_BF16 else 0.01
    assert bool(jnp.allclose(out, ref_out, atol=tol, rtol=tol)), \
        float(jnp.max(jnp.abs(out - ref_out)))
    assert bool(jnp.allclose(mu, ref_mu, atol=0.02, rtol=0.05))
    assert bool(jnp.allclose(log_var, ref_lv, atol=0.02, rtol=0.05))
    print("KERNEL_OK")
</pallas_src>

<mosaic_0001>
module attributes {stable_mosaic.version = 11 : i64} {
  func.func @_vae_fused_kernel(%arg0: i32, %arg1: memref<32x184xf32, #tpu.memory_space<vmem>>, %arg2: memref<32x64xbf16, #tpu.memory_space<vmem>>, %arg3: memref<32x32xbf16, #tpu.memory_space<vmem>>, %arg4: memref<32x12xf32, #tpu.memory_space<vmem>>, %arg5: memref<32x32xf32, #tpu.memory_space<vmem>>) attributes {dimension_semantics = [#tpu.dimension_semantics<arbitrary>], iteration_bounds = array<i64: 1>, scalar_prefetch = 0 : i64, scratch_operands = 1 : i64, tpu.core_type = #tpu.core_type<tc>, window_params = [{pipeline_mode = #tpu.pipeline_mode<synchronous>, transform_indices = @transform_0, window_bounds = array<i64: 32, 184>}, {pipeline_mode = #tpu.pipeline_mode<synchronous>, transform_indices = @transform_1, window_bounds = array<i64: 32, 64>}, {pipeline_mode = #tpu.pipeline_mode<synchronous>, transform_indices = @transform_2, window_bounds = array<i64: 32, 32>}, {pipeline_mode = #tpu.pipeline_mode<synchronous>, transform_indices = @transform_3, window_bounds = array<i64: 32, 12>}]} {
    %c0 = arith.constant 0 : index
    %c0_0 = arith.constant 0 : index
    %0 = vector.load %arg1[%c0, %c0_0] : memref<32x184xf32, #tpu.memory_space<vmem>>, vector<32x32xf32>
    %c0_1 = arith.constant 0 : index
    %c32 = arith.constant 32 : index
    %1 = vector.load %arg1[%c0_1, %c32] : memref<32x184xf32, #tpu.memory_space<vmem>>, vector<32x32xf32>
    %c0_2 = arith.constant 0 : index
    %c64 = arith.constant 64 : index
    %2 = vector.load %arg1[%c0_2, %c64] : memref<32x184xf32, #tpu.memory_space<vmem>>, vector<32x32xf32>
    %cst = arith.constant 0.000000e+00 : f32
    %3 = vector.broadcast %cst : f32 to vector<32x32xf32>
    %4 = arith.cmpf ogt, %1, %3 : vector<32x32xf32>
    %cst_3 = arith.constant 1.000000e+00 : f32
    %5 = vector.broadcast %cst_3 : f32 to vector<32x32xf32>
    %6 = arith.select %4, %2, %5 : vector<32x32xi1>, vector<32x32xf32>
    %7 = math.log %6 : vector<32x32xf32>
    %cst_4 = arith.constant 1.000000e+00 : f32
    %8 = vector.broadcast %cst_4 : f32 to vector<32x32xf32>
    %9 = arith.maximumf %7, %8 : vector<32x32xf32>
    %10 = math.log %9 : vector<32x32xf32>
    %cst_5 = arith.constant 1.000000e+00 : f32
    %11 = vector.broadcast %cst_5 : f32 to vector<32x32xf32>
    %12 = arith.maximumf %10, %11 : vector<32x32xf32>
    %cst_6 = arith.constant 0.000000e+00 : f32
    %13 = vector.broadcast %cst_6 : f32 to vector<32x32xf32>
    %14 = arith.select %4, %12, %13 : vector<32x32xi1>, vector<32x32xf32>
    %c0_7 = arith.constant 0 : index
    %c0_8 = arith.constant 0 : index
    %15 = vector.load %arg2[%c0_7, %c0_8] : memref<32x64xbf16, #tpu.memory_space<vmem>>, vector<32x64xbf16>
    %16 = arith.truncf %0 : vector<32x32xf32> to vector<32x32xbf16>
    %cst_9 = arith.constant dense<0.000000e+00> : vector<32x64xf32>
    %17 = tpu.matmul %16, %15, %cst_9 {dimension_numbers = #tpu.dot_dimension_numbers<[1], [0], [0], [1], [0, 0, 1, 1], [], []>} : vector<32x32xbf16>, vector<32x64xbf16>, vector<32x64xf32> -> vector<32x64xf32>
    %18 = vector.extract_strided_slice %17 {offsets = [0, 0], sizes = [32, 32], strides = [1, 1]} : vector<32x64xf32> to vector<32x32xf32>
    %19 = vector.extract_strided_slice %17 {offsets = [0, 32], sizes = [32, 32], strides = [1, 1]} : vector<32x64xf32> to vector<32x32xf32>
    %c0_10 = arith.constant 0 : index
    %c96 = arith.constant 96 : index
    %20 = vector.load %arg1[%c0_10, %c96] : memref<32x184xf32, #tpu.memory_space<vmem>>, vector<32x6xf32>
    %cst_11 = arith.constant dense<0.000000e+00> : vector<32x6xf32>
    %21 = tpu.matmul %18, %20, %cst_11 {dimension_numbers = #tpu.dot_dimension_numbers<[1], [0], [0], [1], [0, 0, 1, 1], [], []>} : vector<32x32xf32>, vector<32x6xf32>, vector<32x6xf32> -> vector<32x6xf32>
    %22 = vector.extract_strided_slice %21 {offsets = [0, 0], sizes = [32, 2], strides = [1, 1]} : vector<32x6xf32> to vector<32x2xf32>
    %23 = vector.extract_strided_slice %21 {offsets = [0, 2], sizes = [32, 2], strides = [1, 1]} : vector<32x6xf32> to vector<32x2xf32>
    %24 = vector.extract_strided_slice %21 {offsets = [0, 4], sizes = [32, 2], strides = [1, 1]} : vector<32x6xf32> to vector<32x2xf32>
    %cst_12 = arith.constant 5.000000e-01 : f32
    %25 = vector.broadcast %cst_12 : f32 to vector<32x2xf32>
    %26 = arith.mulf %25, %24 : vector<32x2xf32>
    %27 = math.exp %26 : vector<32x2xf32>
    %c0_13 = arith.constant 0 : index
    %c104 = arith.constant 104 : index
    %28 = vector.load %arg1[%c0_13, %c104] : memref<32x184xf32, #tpu.memory_space<vmem>>, vector<32x2xf32>
    %c0_14 = arith.constant 0 : index
    %c112 = arith.constant 112 : index
    %29 = vector.load %arg1[%c0_14, %c112] : memref<32x184xf32, #tpu.memory_space<vmem>>, vector<32x2xf32>
    %30 = arith.mulf %28, %27 : vector<32x2xf32>
    %31 = arith.addf %30, %22 : vector<32x2xf32>
    %32 = arith.mulf %29, %27 : vector<32x2xf32>
    %33 = arith.addf %32, %23 : vector<32x2xf32>
    %34 = tpu.transpose %31, [1, 0] : vector<32x2xf32> -> vector<2x32xf32>
    %35 = arith.truncf %18 : vector<32x32xf32> to vector<32x32xbf16>
    %36 = vector.extract_strided_slice %33 {offsets = [0, 0], sizes = [32, 1], strides = [1, 1]} : vector<32x2xf32> to vector<32x1xf32>
    %37 = vector.extract_strided_slice %34 {offsets = [0, 0], sizes = [1, 32], strides = [1, 1]} : vector<2x32xf32> to vector<1x32xf32>
    %38 = vector.broadcast %36 : vector<32x1xf32> to vector<32x32xf32>
    %39 = vector.broadcast %37 : vector<1x32xf32> to vector<32x32xf32>
    %40 = arith.addf %38, %39 : vector<32x32xf32>
    %cst_15 = arith.constant 0.000000e+00 : f32
    %41 = vector.broadcast %cst_15 : f32 to vector<32x32xf32>
    %42 = arith.cmpf oge, %40, %41 : vector<32x32xf32>
    %cst_16 = arith.constant 2.000000e-01 : f32
    %43 = vector.broadcast %cst_16 : f32 to vector<32x32xf32>
    %44 = arith.mulf %43, %40 : vector<32x32xf32>
    %45 = arith.select %42, %40, %44 : vector<32x32xi1>, vector<32x32xf32>
    %46 = arith.mulf %45, %14 : vector<32x32xf32>
    %cst_17 = arith.constant -1.000000e+30 : f32
    %47 = vector.broadcast %cst_17 : f32 to vector<32x32xf32>
    %48 = arith.select %4, %46, %47 : vector<32x32xi1>, vector<32x32xf32>
    %cst_18 = arith.constant dense<0xFF800000> : vector<32xf32>
    %49 = vector.multi_reduction <maximumf>, %48, %cst_18 [1] : vector<32x32xf32> to vector<32xf32>
    %50 = vector.shape_cast %49 : vector<32xf32> to vector<32x1xf32>
    %51 = vector.broadcast %50 : vector<32x1xf32> to vector<32x32xf32>
    %52 = arith.subf %48, %51 : vector<32x32xf32>
    %53 = math.exp %52 : vector<32x32xf32>
    %cst_19 = arith.constant dense<0.000000e+00> : vector<32xf32>
    %54 = vector.multi_reduction <add>, %53, %cst_19 [1] : vector<32x32xf32> to vector<32xf32>
    %55 = vector.shape_cast %54 : vector<32xf32> to vector<32x1xf32>
    %56 = tpu.reciprocal %55 {approx = true} : vector<32x1xf32> -> vector<32x1xf32>
    %57 = vector.broadcast %56 : vector<32x1xf32> to vector<32x32xf32>
    %58 = arith.mulf %53, %57 : vector<32x32xf32>
    %59 = arith.truncf %58 : vector<32x32xf32> to vector<32x32xbf16>
    %60 = vector.extract_strided_slice %35 {offsets = [0, 0], sizes = [32, 16], strides = [1, 1]} : vector<32x32xbf16> to vector<32x16xbf16>
    %cst_20 = arith.constant dense<0.000000e+00> : vector<32x16xf32>
    %61 = tpu.matmul %59, %60, %cst_20 {dimension_numbers = #tpu.dot_dimension_numbers<[1], [0], [0], [1], [0, 0, 1, 1], [], []>} : vector<32x32xbf16>, vector<32x16xbf16>, vector<32x16xf32> -> vector<32x16xf32>
    %62 = vector.extract_strided_slice %19 {offsets = [0, 0], sizes = [32, 16], strides = [1, 1]} : vector<32x32xf32> to vector<32x16xf32>
    %63 = arith.addf %61, %62 : vector<32x16xf32>
    %64 = vector.extract_strided_slice %0 {offsets = [0, 0], sizes = [32, 16], strides = [1, 1]} : vector<32x32xf32> to vector<32x16xf32>
    %65 = arith.addf %63, %64 : vector<32x16xf32>
    %cst_21 = arith.constant dense<0.000000e+00> : vector<16xf32>
    %66 = vector.multi_reduction <add>, %65, %cst_21 [0] : vector<32x16xf32> to vector<16xf32>
    %67 = vector.shape_cast %66 : vector<16xf32> to vector<1x16xf32>
    %cst_22 = arith.constant 3.200000e+01 : f32
    %68 = vector.broadcast %cst_22 : f32 to vector<1x16xf32>
    %69 = arith.divf %67, %68 : vector<1x16xf32>
    %70 = vector.broadcast %69 : vector<1x16xf32> to vector<32x16xf32>
    %71 = arith.subf %65, %70 : vector<32x16xf32>
    %72 = arith.mulf %71, %71 : vector<32x16xf32>
    %cst_23 = arith.constant dense<0.000000e+00> : vector<16xf32>
    %73 = vector.multi_reduction <add>, %72, %cst_23 [0] : vector<32x16xf32> to vector<16xf32>
    %74 = vector.shape_cast %73 : vector<16xf32> to vector<1x16xf32>
    %cst_24 = arith.constant 3.200000e+01 : f32
    %75 = vector.broadcast %cst_24 : f32 to vector<1x16xf32>
    %76 = arith.divf %74, %75 : vector<1x16xf32>
    %c0_25 = arith.constant 0 : index
    %c120 = arith.constant 120 : index
    %77 = vector.load %arg1[%c0_25, %c120] : memref<32x184xf32, #tpu.memory_space<vmem>>, vector<1x16xf32>
    %c1 = arith.constant 1 : index
    %c120_26 = arith.constant 120 : index
    %78 = vector.load %arg1[%c1, %c120_26] : memref<32x184xf32, #tpu.memory_space<vmem>>, vector<1x16xf32>
    %79 = vector.broadcast %69 : vector<1x16xf32> to vector<32x16xf32>
    %80 = arith.subf %65, %79 : vector<32x16xf32>
    %cst_27 = arith.constant 9.99999974E-6 : f32
    %81 = vector.broadcast %cst_27 : f32 to vector<1x16xf32>
    %82 = arith.addf %76, %81 : vector<1x16xf32>
    %83 = math.rsqrt %82 : vector<1x16xf32>
    %84 = vector.broadcast %83 : vector<1x16xf32> to vector<32x16xf32>
    %85 = arith.mulf %80, %84 : vector<32x16xf32>
    %86 = vector.broadcast %77 : vector<1x16xf32> to vector<32x16xf32>
    %87 = arith.mulf %85, %86 : vector<32x16xf32>
    %88 = vector.broadcast %78 : vector<1x16xf32> to vector<32x16xf32>
    %89 = arith.addf %87, %88 : vector<32x16xf32>
    %cst_28 = arith.constant 0.000000e+00 : f32
    %90 = vector.broadcast %cst_28 : f32 to vector<32x16xf32>
    %91 = arith.maximumf %89, %90 : vector<32x16xf32>
    %c0_29 = arith.constant 0 : index
    %c0_30 = arith.constant 0 : index
    %92 = vector.load %arg5[%c0_29, %c0_30] : memref<32x32xf32, #tpu.memory_space<vmem>>, vector<32x16xf32>
    tpu.vector_store %arg5[%c0_29, %c0_30], %91 {strides = array<i32>} : memref<32x32xf32, #tpu.memory_space<vmem>>, vector<32x16xf32>,
    %93 = vector.extract_strided_slice %33 {offsets = [0, 1], sizes = [32, 1], strides = [1, 1]} : vector<32x2xf32> to vector<32x1xf32>
    %94 = vector.extract_strided_slice %34 {offsets = [1, 0], sizes = [1, 32], strides = [1, 1]} : vector<2x32xf32> to vector<1x32xf32>
    %95 = vector.broadcast %93 : vector<32x1xf32> to vector<32x32xf32>
    %96 = vector.broadcast %94 : vector<1x32xf32> to vector<32x32xf32>
    %97 = arith.addf %95, %96 : vector<32x32xf32>
    %cst_31 = arith.constant 0.000000e+00 : f32
    %98 = vector.broadcast %cst_31 : f32 to vector<32x32xf32>
    %99 = arith.cmpf oge, %97, %98 : vector<32x32xf32>
    %cst_32 = arith.constant 2.000000e-01 : f32
    %100 = vector.broadcast %cst_32 : f32 to vector<32x32xf32>
    %101 = arith.mulf %100, %97 : vector<32x32xf32>
    %102 = arith.select %99, %97, %101 : vector<32x32xi1>, vector<32x32xf32>
    %103 = arith.mulf %102, %14 : vector<32x32xf32>
    %cst_33 = arith.constant -1.000000e+30 : f32
    %104 = vector.broadcast %cst_33 : f32 to vector<32x32xf32>
    %105 = arith.select %4, %103, %104 : vector<32x32xi1>, vector<32x32xf32>
    %cst_34 = arith.constant dense<0xFF800000> : vector<32xf32>
    %106 = vector.multi_reduction <maximumf>, %105, %cst_34 [1] : vector<32x32xf32> to vector<32xf32>
    %107 = vector.shape_cast %106 : vector<32xf32> to vector<32x1xf32>
    %108 = vector.broadcast %107 : vector<32x1xf32> to vector<32x32xf32>
    %109 = arith.subf %105, %108 : vector<32x32xf32>
    %110 = math.exp %109 : vector<32x32xf32>
    %cst_35 = arith.constant dense<0.000000e+00> : vector<32xf32>
    %111 = vector.multi_reduction <add>, %110, %cst_35 [1] : vector<32x32xf32> to vector<32xf32>
    %112 = vector.shape_cast %111 : vector<32xf32> to vector<32x1xf32>
    %113 = tpu.reciprocal %112 {approx = true} : vector<32x1xf32> -> vector<32x1xf32>
    %114 = vector.broadcast %113 : vector<32x1xf32> to vector<32x32xf32>
    %115 = arith.mulf %110, %114 : vector<32x32xf32>
    %116 = arith.truncf %115 : vector<32x32xf32> to vector<32x32xbf16>
    %117 = vector.extract_strided_slice %35 {offsets = [0, 16], sizes = [32, 16], strides = [1, 1]} : vector<32x32xbf16> to vector<32x16xbf16>
    %cst_36 = arith.constant dense<0.000000e+00> : vector<32x16xf32>
    %118 = tpu.matmul %116, %117, %cst_36 {dimension_numbers = #tpu.dot_dimension_numbers<[1], [0], [0], [1], [0, 0, 1, 1], [], []>} : vector<32x32xbf16>, vector<32x16xbf16>, vector<32x16xf32> -> vector<32x16xf32>
    %119 = vector.extract_strided_slice %19 {offsets = [0, 16], sizes = [32, 16], strides = [1, 1]} : vector<32x32xf32> to vector<32x16xf32>
    %120 = arith.addf %118, %119 : vector<32x16xf32>
    %121 = vector.extract_strided_slice %0 {offsets = [0, 16], sizes = [32, 16], strides = [1, 1]} : vector<32x32xf32> to vector<32x16xf32>
    %122 = arith.addf %120, %121 : vector<32x16xf32>
    %cst_37 = arith.constant dense<0.000000e+00> : vector<16xf32>
    %123 = vector.multi_reduction <add>, %122, %cst_37 [0] : vector<32x16xf32> to vector<16xf32>
    %124 = vector.shape_cast %123 : vector<16xf32> to vector<1x16xf32>
    %cst_38 = arith.constant 3.200000e+01 : f32
    %125 = vector.broadcast %cst_38 : f32 to vector<1x16xf32>
    %126 = arith.divf %124, %125 : vector<1x16xf32>
    %127 = vector.broadcast %126 : vector<1x16xf32> to vector<32x16xf32>
    %128 = arith.subf %122, %127 : vector<32x16xf32>
    %129 = arith.mulf %128, %128 : vector<32x16xf32>
    %cst_39 = arith.constant dense<0.000000e+00> : vector<16xf32>
    %130 = vector.multi_reduction <add>, %129, %cst_39 [0] : vector<32x16xf32> to vector<16xf32>
    %131 = vector.shape_cast %130 : vector<16xf32> to vector<1x16xf32>
    %cst_40 = arith.constant 3.200000e+01 : f32
    %132 = vector.broadcast %cst_40 : f32 to vector<1x16xf32>
    %133 = arith.divf %131, %132 : vector<1x16xf32>
    %c0_41 = arith.constant 0 : index
    %c136 = arith.constant 136 : index
    %134 = vector.load %arg1[%c0_41, %c136] : memref<32x184xf32, #tpu.memory_space<vmem>>, vector<1x16xf32>
    %c1_42 = arith.constant 1 : index
    %c136_43 = arith.constant 136 : index
    %135 = vector.load %arg1[%c1_42, %c136_43] : memref<32x184xf32, #tpu.memory_space<vmem>>, vector<1x16xf32>
    %136 = vector.broadcast %126 : vector<1x16xf32> to vector<32x16xf32>
    %137 = arith.subf %122, %136 : vector<32x16xf32>
    %cst_44 = arith.constant 9.99999974E-6 : f32
    %138 = vector.broadcast %cst_44 : f32 to vector<1x16xf32>
    %139 = arith.addf %133, %138 : vector<1x16xf32>
    %140 = math.rsqrt %139 : vector<1x16xf32>
    %141 = vector.broadcast %140 : vector<1x16xf32> to vector<32x16xf32>
    %142 = arith.mulf %137, %141 : vector<32x16xf32>
    %143 = vector.broadcast %134 : vector<1x16xf32> to vector<32x16xf32>
    %144 = arith.mulf %142, %143 : vector<32x16xf32>
    %145 = vector.broadcast %135 : vector<1x16xf32> to vector<32x16xf32>
    %146 = arith.addf %144, %145 : vector<32x16xf32>
    %cst_45 = arith.constant 0.000000e+00 : f32
    %147 = vector.broadcast %cst_45 : f32 to vector<32x16xf32>
    %148 = arith.maximumf %146, %147 : vector<32x16xf32>
    %c0_46 = arith.constant 0 : index
    %c16 = arith.constant 16 : index
    %149 = vector.load %arg5[%c0_46, %c16] : memref<32x32xf32, #tpu.memory_space<vmem>>, vector<32x16xf32>
    tpu.vector_store %arg5[%c0_46, %c16], %148 {strides = array<i32>} : memref<32x32xf32, #tpu.memory_space<vmem>>, vector<32x16xf32>,
    %c0_47 = arith.constant 0 : index
    %c0_48 = arith.constant 0 : index
    %150 = vector.load %arg5[%c0_47, %c0_48] : memref<32x32xf32, #tpu.memory_space<vmem>>, vector<32x32xf32>
    %c0_49 = arith.constant 0 : index
    %c0_50 = arith.constant 0 : index
    %151 = vector.load %arg3[%c0_49, %c0_50] : memref<32x32xbf16, #tpu.memory_space<vmem>>, vector<32x32xbf16>
    %152 = arith.truncf %150 : vector<32x32xf32> to vector<32x32xbf16>
    %cst_51 = arith.constant dense<0.000000e+00> : vector<32x32xf32>
    %153 = tpu.matmul %152, %151, %cst_51 {dimension_numbers = #tpu.dot_dimension_numbers<[1], [0], [0], [1], [0, 0, 1, 1], [], []>} : vector<32x32xbf16>, vector<32x32xbf16>, vector<32x32xf32> -> vector<32x32xf32>
    %154 = vector.extract_strided_slice %153 {offsets = [0, 0], sizes = [32, 16], strides = [1, 1]} : vector<32x32xf32> to vector<32x16xf32>
    %155 = vector.extract_strided_slice %153 {offsets = [0, 16], sizes = [32, 16], strides = [1, 1]} : vector<32x32xf32> to vector<32x16xf32>
    %c0_52 = arith.constant 0 : index
    %c152 = arith.constant 152 : index
    %156 = vector.load %arg1[%c0_52, %c152] : memref<32x184xf32, #tpu.memory_space<vmem>>, vector<16x6xf32>
    %cst_53 = arith.constant dense<0.000000e+00> : vector<32x6xf32>
    %157 = tpu.matmul %154, %156, %cst_53 {dimension_numbers = #tpu.dot_dimension_numbers<[1], [0], [0], [1], [0, 0, 1, 1], [], []>} : vector<32x16xf32>, vector<16x6xf32>, vector<32x6xf32> -> vector<32x6xf32>
    %158 = vector.extract_strided_slice %157 {offsets = [0, 0], sizes = [32, 2], strides = [1, 1]} : vector<32x6xf32> to vector<32x2xf32>
    %159 = vector.extract_strided_slice %157 {offsets = [0, 2], sizes = [32, 2], strides = [1, 1]} : vector<32x6xf32> to vector<32x2xf32>
    %160 = vector.extract_strided_slice %157 {offsets = [0, 4], sizes = [32, 2], strides = [1, 1]} : vector<32x6xf32> to vector<32x2xf32>
    %cst_54 = arith.constant 5.000000e-01 : f32
    %161 = vector.broadcast %cst_54 : f32 to vector<32x2xf32>
    %162 = arith.mulf %161, %160 : vector<32x2xf32>
    %163 = math.exp %162 : vector<32x2xf32>
    %c0_55 = arith.constant 0 : index
    %c160 = arith.constant 160 : index
    %164 = vector.load %arg1[%c0_55, %c160] : memref<32x184xf32, #tpu.memory_space<vmem>>, vector<32x2xf32>
    %c0_56 = arith.constant 0 : index
    %c168 = arith.constant 168 : index
    %165 = vector.load %arg1[%c0_56, %c168] : memref<32x184xf32, #tpu.memory_space<vmem>>, vector<32x2xf32>
    %166 = arith.mulf %164, %163 : vector<32x2xf32>
    %167 = arith.addf %166, %158 : vector<32x2xf32>
    %168 = arith.mulf %165, %163 : vector<32x2xf32>
    %169 = arith.addf %168, %159 : vector<32x2xf32>
    %170 = tpu.transpose %167, [1, 0] : vector<32x2xf32> -> vector<2x32xf32>
    %171 = arith.truncf %154 : vector<32x16xf32> to vector<32x16xbf16>
    %172 = vector.extract_strided_slice %169 {offsets = [0, 0], sizes = [32, 1], strides = [1, 1]} : vector<32x2xf32> to vector<32x1xf32>
    %173 = vector.extract_strided_slice %170 {offsets = [0, 0], sizes = [1, 32], strides = [1, 1]} : vector<2x32xf32> to vector<1x32xf32>
    %174 = vector.broadcast %172 : vector<32x1xf32> to vector<32x32xf32>
    %175 = vector.broadcast %173 : vector<1x32xf32> to vector<32x32xf32>
    %176 = arith.addf %174, %175 : vector<32x32xf32>
    %cst_57 = arith.constant 0.000000e+00 : f32
    %177 = vector.broadcast %cst_57 : f32 to vector<32x32xf32>
    %178 = arith.cmpf oge, %176, %177 : vector<32x32xf32>
    %cst_58 = arith.constant 2.000000e-01 : f32
    %179 = vector.broadcast %cst_58 : f32 to vector<32x32xf32>
    %180 = arith.mulf %179, %176 : vector<32x32xf32>
    %181 = arith.select %178, %176, %180 : vector<32x32xi1>, vector<32x32xf32>
    %182 = arith.mulf %181, %14 : vector<32x32xf32>
    %cst_59 = arith.constant -1.000000e+30 : f32
    %183 = vector.broadcast %cst_59 : f32 to vector<32x32xf32>
    %184 = arith.select %4, %182, %183 : vector<32x32xi1>, vector<32x32xf32>
    %cst_60 = arith.constant dense<0xFF800000> : vector<32xf32>
    %185 = vector.multi_reduction <maximumf>, %184, %cst_60 [1] : vector<32x32xf32> to vector<32xf32>
    %186 = vector.shape_cast %185 : vector<32xf32> to vector<32x1xf32>
    %187 = vector.broadcast %186 : vector<32x1xf32> to vector<32x32xf32>
    %188 = arith.subf %184, %187 : vector<32x32xf32>
    %189 = math.exp %188 : vector<32x32xf32>
    %cst_61 = arith.constant dense<0.000000e+00> : vector<32xf32>
    %190 = vector.multi_reduction <add>, %189, %cst_61 [1] : vector<32x32xf32> to vector<32xf32>
    %191 = vector.shape_cast %190 : vector<32xf32> to vector<32x1xf32>
    %192 = tpu.reciprocal %191 {approx = true} : vector<32x1xf32> -> vector<32x1xf32>
    %193 = vector.broadcast %192 : vector<32x1xf32> to vector<32x32xf32>
    %194 = arith.mulf %189, %193 : vector<32x32xf32>
    %195 = arith.truncf %194 : vector<32x32xf32> to vector<32x32xbf16>
    %196 = vector.extract_strided_slice %171 {offsets = [0, 0], sizes = [32, 8], strides = [1, 1]} : vector<32x16xbf16> to vector<32x8xbf16>
    %cst_62 = arith.constant dense<0.000000e+00> : vector<32x8xf32>
    %197 = tpu.matmul %195, %196, %cst_62 {dimension_numbers = #tpu.dot_dimension_numbers<[1], [0], [0], [1], [0, 0, 1, 1], [], []>} : vector<32x32xbf16>, vector<32x8xbf16>, vector<32x8xf32> -> vector<32x8xf32>
    %198 = vector.extract_strided_slice %155 {offsets = [0, 0], sizes = [32, 8], strides = [1, 1]} : vector<32x16xf32> to vector<32x8xf32>
    %199 = arith.addf %197, %198 : vector<32x8xf32>
    %200 = vector.extract_strided_slice %169 {offsets = [0, 1], sizes = [32, 1], strides = [1, 1]} : vector<32x2xf32> to vector<32x1xf32>
    %201 = vector.extract_strided_slice %170 {offsets = [1, 0], sizes = [1, 32], strides = [1, 1]} : vector<2x32xf32> to vector<1x32xf32>
    %202 = vector.broadcast %200 : vector<32x1xf32> to vector<32x32xf32>
    %203 = vector.broadcast %201 : vector<1x32xf32> to vector<32x32xf32>
    %204 = arith.addf %202, %203 : vector<32x32xf32>
    %cst_63 = arith.constant 0.000000e+00 : f32
    %205 = vector.broadcast %cst_63 : f32 to vector<32x32xf32>
    %206 = arith.cmpf oge, %204, %205 : vector<32x32xf32>
    %cst_64 = arith.constant 2.000000e-01 : f32
    %207 = vector.broadcast %cst_64 : f32 to vector<32x32xf32>
    %208 = arith.mulf %207, %204 : vector<32x32xf32>
    %209 = arith.select %206, %204, %208 : vector<32x32xi1>, vector<32x32xf32>
    %210 = arith.mulf %209, %14 : vector<32x32xf32>
    %cst_65 = arith.constant -1.000000e+30 : f32
    %211 = vector.broadcast %cst_65 : f32 to vector<32x32xf32>
    %212 = arith.select %4, %210, %211 : vector<32x32xi1>, vector<32x32xf32>
    %cst_66 = arith.constant dense<0xFF800000> : vector<32xf32>
    %213 = vector.multi_reduction <maximumf>, %212, %cst_66 [1] : vector<32x32xf32> to vector<32xf32>
    %214 = vector.shape_cast %213 : vector<32xf32> to vector<32x1xf32>
    %215 = vector.broadcast %214 : vector<32x1xf32> to vector<32x32xf32>
    %216 = arith.subf %212, %215 : vector<32x32xf32>
    %217 = math.exp %216 : vector<32x32xf32>
    %cst_67 = arith.constant dense<0.000000e+00> : vector<32xf32>
    %218 = vector.multi_reduction <add>, %217, %cst_67 [1] : vector<32x32xf32> to vector<32xf32>
    %219 = vector.shape_cast %218 : vector<32xf32> to vector<32x1xf32>
    %220 = tpu.reciprocal %219 {approx = true} : vector<32x1xf32> -> vector<32x1xf32>
    %221 = vector.broadcast %220 : vector<32x1xf32> to vector<32x32xf32>
    %222 = arith.mulf %217, %221 : vector<32x32xf32>
    %223 = arith.truncf %222 : vector<32x32xf32> to vector<32x32xbf16>
    %224 = vector.extract_strided_slice %171 {offsets = [0, 8], sizes = [32, 8], strides = [1, 1]} : vector<32x16xbf16> to vector<32x8xbf16>
    %cst_68 = arith.constant dense<0.000000e+00> : vector<32x8xf32>
    %225 = tpu.matmul %223, %224, %cst_68 {dimension_numbers = #tpu.dot_dimension_numbers<[1], [0], [0], [1], [0, 0, 1, 1], [], []>} : vector<32x32xbf16>, vector<32x8xbf16>, vector<32x8xf32> -> vector<32x8xf32>
    %226 = vector.extract_strided_slice %155 {offsets = [0, 8], sizes = [32, 8], strides = [1, 1]} : vector<32x16xf32> to vector<32x8xf32>
    %227 = arith.addf %225, %226 : vector<32x8xf32>
    %228 = arith.addf %199, %227 : vector<32x8xf32>
    %c0_69 = arith.constant 0 : index
    %c176 = arith.constant 176 : index
    %229 = vector.load %arg1[%c0_69, %c176] : memref<32x184xf32, #tpu.memory_space<vmem>>, vector<1x8xf32>
    %cst_70 = arith.constant 5.000000e-01 : f32
    %230 = vector.broadcast %cst_70 : f32 to vector<32x8xf32>
    %231 = arith.mulf %228, %230 : vector<32x8xf32>
    %232 = vector.broadcast %229 : vector<1x8xf32> to vector<32x8xf32>
    %233 = arith.addf %231, %232 : vector<32x8xf32>
    %c0_71 = arith.constant 0 : index
    %c0_72 = arith.constant 0 : index
    %234 = vector.load %arg4[%c0_71, %c0_72] : memref<32x12xf32, #tpu.memory_space<vmem>>, vector<32x8xf32>
    tpu.vector_store %arg4[%c0_71, %c0_72], %233 {strides = array<i32>} : memref<32x12xf32, #tpu.memory_space<vmem>>, vector<32x8xf32>,
    %235 = arith.addf %158, %159 : vector<32x2xf32>
    %c0_73 = arith.constant 0 : index
    %c8 = arith.constant 8 : index
    %236 = vector.load %arg4[%c0_73, %c8] : memref<32x12xf32, #tpu.memory_space<vmem>>, vector<32x2xf32>
    tpu.vector_store %arg4[%c0_73, %c8], %235 {strides = array<i32>} : memref<32x12xf32, #tpu.memory_space<vmem>>, vector<32x2xf32>,
    %cst_74 = arith.constant 2.000000e+00 : f32
    %237 = vector.broadcast %cst_74 : f32 to vector<32x2xf32>
    %238 = arith.mulf %237, %160 : vector<32x2xf32>
    %c0_75 = arith.constant 0 : index
    %c10 = arith.constant 10 : index
    %239 = vector.load %arg4[%c0_75, %c10] : memref<32x12xf32, #tpu.memory_space<vmem>>, vector<32x2xf32>
    tpu.vector_store %arg4[%c0_75, %c10], %238 {strides = array<i32>} : memref<32x12xf32, #tpu.memory_space<vmem>>, vector<32x2xf32>,
    return
  }
  func.func @transform_0(%arg0: i32) -> (i32, i32) {
    %c0_i32 = arith.constant 0 : i32
    %c0_i32_0 = arith.constant 0 : i32
    %c0_i32_1 = arith.constant 0 : i32
    return %c0_i32, %c0_i32_0 : i32, i32
  }
  func.func @transform_1(%arg0: i32) -> (i32, i32) {
    %c0_i32 = arith.constant 0 : i32
    %c0_i32_0 = arith.constant 0 : i32
    %c0_i32_1 = arith.constant 0 : i32
    return %c0_i32, %c0_i32_0 : i32, i32
  }
  func.func @transform_2(%arg0: i32) -> (i32, i32) {
    %c0_i32 = arith.constant 0 : i32
    %c0_i32_0 = arith.constant 0 : i32
    %c0_i32_1 = arith.constant 0 : i32
    return %c0_i32, %c0_i32_0 : i32, i32
  }
  func.func @transform_3(%arg0: i32) -> (i32, i32) {
    %c0_i32 = arith.constant 0 : i32
    %c0_i32_0 = arith.constant 0 : i32
    %c0_i32_1 = arith.constant 0 : i32
    return %c0_i32, %c0_i32_0 : i32, i32
  }
}

</mosaic_0001>

<bundles_post_ra>
// kernel: tpu_custom_call.1
= control target key start
LH: loop header
LB: loop body
LE: loop exit
PB: predicated region body
PF: predicated region fallthrough
CT: control target
= control target key end

     0   :  { %8 = vsyncpa [#allocation4], 0  ;;  %s2474_s0 = inlined_call_operand.hbm [shape: f32[32,184], index: 0, kind: input, shape index: {}]   ;;  %s2475_s1 = inlined_call_operand.hbm [shape: bf16[32,64], index: 1, kind: input, shape index: {}]   ;;  %s2476_s2 = inlined_call_operand.hbm [shape: bf16[32,32], index: 2, kind: input, shape index: {}]   ;;  %s2477_s3 = inlined_call_operand.vmem [shape: f32[32,12], index: 3, kind: output, shape index: {}]  }
   0x1   :  { %9 = vsyncpa [#allocation6], 0  ;;  %s27_s14 = sshll.u32 %s2475_s1, 4  ;;  %s1878_s15 = smov [#allocation5]   ;;  %s28_s14 = int_to_ptr.hbm [resolvable:$true] %s27_s14 }
   0x2   :  { %s29_s16 = sshll.u32 %s1878_s15, 4  ;;  %s14_s19 = sshll.u32 %s2474_s0, 4  ;;  %s30_s16 = int_to_ptr.vmem [resolvable:$true] %s29_s16  ;;  %s15_s19 = int_to_ptr.hbm [resolvable:$true] %s14_s19 }
   0x3   :  { %s1879_s20 = smov 64   ;;  %s1880_s21 = smov 4  }
   0x4   :  { %35 = dma.hbm_to_vmem [thread:$0]  %s28_s14, 256, %s30_s16, [#allocation6], %s1879_s20, %s1879_s20, %s1880_s21  }
   0x5   :  { %s1881_s22 = smov [#allocation3]   ;;  %s1882_s24 = smov 256  }
   0x6   :  { %s16_s23 = sshll.u32 %s1881_s22, 4  ;;  %s1883_s25 = smov 16   ;;  %s17_s23 = int_to_ptr.vmem [resolvable:$true] %s16_s23 }
   0x7   :  { %22 = dma.hbm_to_vmem [thread:$0]  %s15_s19, 1024, %s17_s23, [#allocation4], %s1882_s24, %s1882_s24, %s1883_s25  }
   0x8   :  { %s40_s27 = sshll.u32 %s2476_s2, 4  ;;  %s1884_s28 = smov [#allocation7]   ;;  %s41_s27 = int_to_ptr.hbm [resolvable:$true] %s40_s27 }
   0x9   :  { %s42_s29 = sshll.u32 %s1884_s28, 4  ;;  %s43_s29 = int_to_ptr.vmem [resolvable:$true] %s42_s29 }
   0xa   :  { %48 = dma.hbm_to_vmem [thread:$0]  %s41_s27, 256, %s43_s29, [#allocation6], %s1879_s20, %s1879_s20, %s1880_s21  }
   0xb   :  { %1874 = dma.done.wait [#allocation4], 1024  }
   0xc   :  { %1875 = vsyncadd [#allocation4], 4294966272 }
   0xd   :  { %1876 = dma.done.wait [#allocation6], 512  }
   0xe   :  { %1877 = vsyncadd [#allocation6], 4294966784  ;;  %v1634_v0 = vld [vmem:[#allocation5 + $0x8] sm:$0xff]  ;;  %v1936_v1 = vld [vmem:[#allocation3 + $0x20] sm:$0xff]  ;;  %s1885_s0 = smov 32   ;;  %vm136_vm0 = vcmask 261120  }
   0xf   :  { %v1938_v2 = vld [vmem:[#allocation3 + $0x30] sm:$0xff]  ;;  %149 = vmatpush.bf16.msra.mxu0 %v1634_v0  ;;  %v1633_v4 = vld [vmem:[#allocation5] sm:$0xff]  ;;  %s1886_s2 = smov 96   ;;  %s1887_s30 = smov 104   ;;  %v1891_v57 = vmov 113   ;;  %vm68_vm3 = vcmp.gt.f32.partialorder %v1936_v1, 0.0 }
  0x10   :  { %v1666_v3 = vpack.i.bf16 %v1936_v1, %v1938_v2  ;;  %v1942_v5 = vld [vmem:[#allocation3] sm:$0xff]  ;;  %v1944_v6 = vld [vmem:[#allocation3 + $0x10] sm:$0xff]  ;;  %v123_v9 = vpack.c.bf16 %v1938_v2, %v1936_v1  ;;  %s1888_s4 = smov 108   ;;  %s1889_s5 = smov 100   ;;  %1678 = vset.pattern.permute.xlu0 %v1891_v57  ;;  %1676 = vset.pattern.permute.xlu2 %v1891_v57  ;;  %vm69_vm4 = vcmp.gt.f32.partialorder %v1938_v2, 0.0  ;;  %vm428_vm13 = vcmask 523520  }
  0x11   :  { %v122_v7 = vpack.c.bf16 %v1944_v6, %v1942_v5  ;;  %v1671_v8 = vpack.i.bf16 %v1942_v5, %v1944_v6  ;;  %74 = vrot.lane.b32.xlu1 %v1942_v5, %s1886_s2  ;;  %76 = vrot.lane.b32.xlu2 %v1944_v6, %s1886_s2  ;;  %vm66_vm1 = vcmp.gt.f32.partialorder %v1942_v5, 0.0  ;;  %s1890_s6 = smov 110   ;;  %vm67_vm2 = vcmp.gt.f32.partialorder %v1944_v6, 0.0  ;;  %s1892_s7 = smov 24  }
  0x12   :  { %1667 = vrot.lane.b32.xlu0 %v1666_v3, %s1885_s0  ;;  %s1894_s8 = smov 112   ;;  %s1895_s9 = smov 80   ;;  %vm550_vm14 = vcmask 130048  }
  0x13   :  { %150 = vmatpush.bf16.msra.mxu0 %v1633_v4  ;;  %s1896_s10 = smov 120   ;;  %s1897_s11 = smov 8  }
  0x14   :  { %s1899_s12 = smov 28   ;;  %s1900_s13 = smov 36  }
  0x15   :  { %s1901_s14 = smov 38   ;;  %s1904_s15 = smov 126  }
  0x16   :  { %1605 = vmatmul.msk.bf16.vlgmr.msra.gmra.mxu0 %vm136_vm0, %v122_v7  ;;  %s1905_s16 = smov 6  }
  0x1a   :  { %1672 = vrot.lane.b32.xlu0 %v1671_v8, %s1885_s0  ;;  %v1893_v8 = vmov 112  }
  0x1b   :  { %1677 = vset.pattern.permute.xlu1 %v1893_v8 }
  0x26   :  { %1606 = vmatmul.msk.bf16.gmra.mxu0 %vm136_vm0, %v123_v9 }
  0x6b   :  { %v77_v55 = vpop.permute.xlu2 %76 }
  0x6c   :  { %v87_v0 = vsel %vm67_vm2, %v77_v55, 1.0 }
  0x83   :  { %v75_v35 = vpop.permute.xlu1 %74 }
  0x84   :  { %v1668_v10 = vpop.permute.xlu0 %1667  ;;  %v86_v38 = vsel %vm66_vm1, %v75_v35, 1.0 }
  0x85   :  { %v1669_v11 = vunpack.i.l.bf16 %v1668_v10  ;;  %v1670_v12 = vunpack.i.h.bf16 %v1668_v10 }
  0x87   :  { %198 = vmatpush.msra.mxu1 %v1669_v11 }
  0x89   :  { %199 = vmatpush.msra.mxu1 %v1670_v12 }
  0x8c   :  { %v1673_v13 = vpop.permute.xlu0 %1672 }
  0x8d   :  { %v1674_v14 = vunpack.i.l.bf16 %v1673_v13  ;;  %v1675_v15 = vunpack.i.h.bf16 %v1673_v13 }
  0x8f   :  { %200 = vmatpush.msra.mxu1 %v1674_v14 }
  0x91   :  { %201 = vmatpush.msra.mxu1 %v1675_v15 }
  0x93   :  { %v1960_v16 = vpop.f32.mrf.mxu0 }
  0x94   :  { %1607 = vmatmul.msk.f32.vlgmr.msra.gmra.mxu1 %vm136_vm0, %v1960_v16  ;;  %v347_v25 = vpack.c.bf16 %v1960_v16, %v1960_v16 }
  0x96   :  { %v501_v28 = vunpack.c.l.b16 %v347_v25 }
  0x9b   :  { %v1964_v17 = vpop.f32.mrf.mxu0 }
  0x9c   :  { %1608 = vmatmul.msk.f32.gmra.mxu1 %vm136_vm0, %v1964_v17  ;;  %v348_v22 = vpack.c.bf16 %v1964_v17, %v1964_v17 }
  0x9e   :  { %v502_v27 = vunpack.c.l.b16 %v348_v22 }
  0xa0   :  { %v1987_v29 = vpack.c.b16 %v502_v27, %v501_v28 }
  0xa3   :  { %v1968_v18 = vpop.f32.mrf.mxu0 }
  0xa4   :  { %1609 = vmatmul.msk.f32.gmra.mxu1 %vm136_vm0, %v1968_v18  ;;  %v349_v19 = vpack.c.bf16 %v1968_v18, %v1968_v18 }
  0xa6   :  { %v503_v23 = vunpack.c.l.b16 %v349_v19 }
  0xab   :  { %v1974_v20 = vpop.f32.mrf.mxu0 }
  0xac   :  { %1610 = vmatmul.msk.f32.gmra.mxu1 %vm136_vm0, %v1974_v20  ;;  %v350_v21 = vpack.c.bf16 %v1974_v20, %v1974_v20 }
  0xae   :  { %v504_v24 = vunpack.c.l.b16 %v350_v21 }
  0xb0   :  { %v1984_v26 = vpack.c.b16 %v504_v24, %v503_v23 }
  0xb2   :  { %533 = vmatpush.bf16.msra.mxu2 %v1984_v26 }
  0xb6   :  { %534 = vmatpush.bf16.msra.mxu2 %v1987_v29 }
 0x111   :  { %v203_v30 = vpop.f32.mrf.mxu1 }
 0x112   :  { %v215_v31 = vmul.f32 0.5, %v203_v30  ;;  %251 = vrot.lane.b32.xlu1 %v203_v30, %s1887_s30 }
 0x114   :  { %v219_v32 = vmul.f32 1.442695, %v215_v31 }
 0x116   :  { %1696 = vpow2.f32 %v219_v32 }
 0x119   :  { %v206_v33 = vpop.f32.mrf.mxu1 }
 0x11a   :  { %v216_v34 = vmul.f32 0.5, %v206_v33  ;;  %253 = vrot.lane.b32.xlu2 %v206_v33, %s1887_s30 }
 0x11c   :  { %v1697_v36 = vpop.eup %1696  ;;  %v221_v37 = vmul.f32 1.442695, %v216_v34 }
 0x11d   :  { %267 = vrot.lane.b32.xlu0 %v1697_v36, %s1888_s4  ;;  %231 = vrot.lane.b32.xlu1 %v1697_v36, %s1889_s5 }
 0x11e   :  { %1698 = vpow2.f32 %v221_v37 }
 0x11f   :  { %1700 = vlog2.f32 %v86_v38 }
 0x121   :  { %v209_v39 = vpop.f32.mrf.mxu1 }
 0x122   :  { %v217_v40 = vmul.f32 0.5, %v209_v39 }
 0x124   :  { %v1699_v41 = vpop.eup %1698  ;;  %v223_v43 = vmul.f32 1.442695, %v217_v40 }
 0x125   :  { %233 = vrot.lane.b32.xlu2 %v1699_v41, %s1889_s5  ;;  %255 = vrot.lane.b32.xlu1 %v209_v39, %s1887_s30  ;;  %v1701_v42 = vpop.eup %1700 }
 0x126   :  { %v91_v45 = vmul.f32 0.6931472, %v1701_v42  ;;  %1702 = vpow2.f32 %v223_v43 }
 0x128   :  { %v98_v48 = vmax.f32 %v91_v45, 1.0 }
 0x129   :  { %v212_v44 = vpop.f32.mrf.mxu1 }
 0x12a   :  { %v218_v46 = vmul.f32 0.5, %v212_v44  ;;  %257 = vrot.lane.b32.xlu0 %v212_v44, %s1887_s30 }
 0x12c   :  { %v225_v47 = vmul.f32 1.442695, %v218_v46  ;;  %v1703_v49 = vpop.eup %1702 }
 0x12d   :  { %269 = vrot.lane.b32.xlu1 %v1699_v41, %s1888_s4 }
 0x12e   :  { %1704 = vpow2.f32 %v225_v47 }
 0x12f   :  { %1706 = vlog2.f32 %v98_v48 }
 0x130   :  { %1708 = vlog2.f32 %v87_v0 }
 0x132   :  { %235 = vrot.lane.b32.xlu0 %v1703_v49, %s1889_s5 }
 0x134   :  { %v1705_v50 = vpop.eup %1704 }
 0x135   :  { %283 = vrot.lane.b32.xlu1 %v203_v30, %s1890_s6  ;;  %237 = vrot.lane.b32.xlu2 %v1705_v50, %s1889_s5  ;;  %v1707_v51 = vpop.eup %1706 }
 0x136   :  { %v103_v52 = vmul.f32 0.6931472, %v1707_v51  ;;  %v1709_v11 = vpop.eup %1708 }
 0x137   :  { %v93_v14 = vmul.f32 0.6931472, %v1709_v11 }
 0x138   :  { %v110_v53 = vmax.f32 %v103_v52, 1.0 }
 0x139   :  { %v99_v24 = vmax.f32 %v93_v14, 1.0 }
 0x13a   :  { %80 = vrot.lane.b32.xlu0 %v1938_v2, %s1886_s2  ;;  %v114_v54 = vsel %vm66_vm1, %v110_v53, 0.0 }
 0x13d   :  { %289 = vrot.lane.b32.xlu1 %v212_v44, %s1890_s6  ;;  %78 = vrot.lane.b32.xlu2 %v1936_v1, %s1886_s2 }
 0x142   :  { %271 = vrot.lane.b32.xlu0 %v1703_v49, %s1888_s4 }
 0x145   :  { %285 = vrot.lane.b32.xlu2 %v206_v33, %s1890_s6  ;;  %392 = vrot.lane.b32.xlu1 %v114_v54, %s1886_s2 }
 0x14a   :  { %287 = vrot.lane.b32.xlu0 %v209_v39, %s1890_s6 }
 0x14d   :  { %273 = vrot.lane.b32.xlu1 %v1705_v50, %s1888_s4 }
 0x174   :  { %v254_v56 = vpop.permute.xlu2 %253 }
 0x17f   :  { %v234_v59 = vpop.permute.xlu2 %233 }
 0x180   :  { %v244_v34 = vmul.f32 %v234_v59, %v1944_v6 }
 0x182   :  { %v264_v40 = vadd.f32 %v254_v56, %v244_v34 }
 0x184   :  { %v252_v58 = vpop.permute.xlu1 %251 }
 0x18f   :  { %v232_v60 = vpop.permute.xlu1 %231  ;;  %v2011_v62 = vpop.permute.xlu2 %237 }
 0x190   :  { %v243_v61 = vmul.f32 %v232_v60, %v1942_v5  ;;  %v268_v3 = vpop.permute.xlu0 %267  ;;  %v246_v60 = vmul.f32 %v2011_v62, %v1938_v2 }
 0x191   :  { %v279_v27 = vmul.f32 %v268_v3, %v1942_v5 }
 0x192   :  { %v263_v63 = vadd.f32 %v252_v58, %v243_v61 }
 0x194   :  { %303 = vrot.lane.b32.xlu2 %v263_v63, %s1892_s7 }
 0x197   :  { %v256_v4 = vpop.permute.xlu1 %255  ;;  %v79_v7 = vpop.permute.xlu2 %78 }
 0x198   :  { %v88_v9 = vsel %vm68_vm3, %v79_v7, 1.0 }
 0x199   :  { %1710 = vlog2.f32 %v88_v9 }
 0x19c   :  { %v2021_v10 = vpop.permute.xlu0 %257 }
 0x19d   :  { %v266_v63 = vadd.f32 %v2021_v10, %v246_v60 }
 0x19f   :  { %v270_v12 = vpop.permute.xlu1 %269  ;;  %v1711_v13 = vpop.eup %1710 }
 0x1a0   :  { %v280_v15 = vmul.f32 %v270_v12, %v1944_v6  ;;  %v95_v19 = vmul.f32 0.6931472, %v1711_v13  ;;  %v286_v21 = vpop.permute.xlu2 %285 }
 0x1a2   :  { %v296_v22 = vadd.f32 %v286_v21, %v280_v15  ;;  %v100_v23 = vmax.f32 %v95_v19, 1.0 }
 0x1a4   :  { %v236_v25 = vpop.permute.xlu0 %235  ;;  %651 = vperm.xlu0 %1678, %v296_v22   ;;  %1712 = vlog2.f32 %v100_v23 }
 0x1a5   :  { %v245_v28 = vmul.f32 %v236_v25, %v1936_v1  ;;  %1714 = vlog2.f32 %v99_v24 }
 0x1a7   :  { %v284_v30 = vpop.permute.xlu1 %283  ;;  %v265_v32 = vadd.f32 %v256_v4, %v245_v28 }
 0x1a8   :  { %v295_v31 = vadd.f32 %v284_v30, %v279_v27 }
 0x1aa   :  { %647 = vperm.xlu2 %1676, %v295_v31   ;;  %v1713_v33 = vpop.eup %1712 }
 0x1ab   :  { %v107_v36 = vmul.f32 0.6931472, %v1713_v33  ;;  %v1715_v38 = vpop.eup %1714 }
 0x1ac   :  { %v81_v35 = vpop.permute.xlu0 %80  ;;  %307 = vrot.lane.b32.xlu0 %v265_v32, %s1892_s7  ;;  %v105_v42 = vmul.f32 0.6931472, %v1715_v38 }
 0x1ad   :  { %v89_v37 = vsel %vm69_vm4, %v81_v35, 1.0  ;;  %v112_v39 = vmax.f32 %v107_v36, 1.0 }
 0x1ae   :  { %1716 = vlog2.f32 %v89_v37  ;;  %v111_v46 = vmax.f32 %v105_v42, 1.0 }
 0x1af   :  { %v116_v41 = vsel %vm68_vm3, %v112_v39, 0.0  ;;  %v290_v48 = vpop.permute.xlu1 %289 }
 0x1b0   :  { %396 = vrot.lane.b32.xlu1 %v116_v41, %s1886_s2  ;;  %v115_v49 = vsel %vm67_vm2, %v111_v46, 0.0 }
 0x1b2   :  { %305 = vrot.lane.b32.xlu2 %v264_v40, %s1892_s7 }
 0x1b3   :  { %1679 = vset.pattern.permute.xlu2 %v1893_v8 }
 0x1b4   :  { %v1717_v43 = vpop.eup %1716  ;;  %v272_v44 = vpop.permute.xlu0 %271 }
 0x1b5   :  { %v97_v45 = vmul.f32 0.6931472, %v1717_v43  ;;  %v281_v51 = vmul.f32 %v272_v44, %v1936_v1 }
 0x1b7   :  { %v101_v47 = vmax.f32 %v97_v45, 1.0  ;;  %v2041_v56 = vpop.permute.xlu1 %392 }
 0x1b8   :  { %353 = vperm.xlu1 %1677, %v295_v31  }
 0x1b9   :  { %1718 = vlog2.f32 %v101_v47 }
 0x1ba   :  { %394 = vrot.lane.b32.xlu2 %v115_v49, %s1886_s2 }
 0x1bc   :  { %v288_v50 = vpop.permute.xlu0 %287 }
 0x1bd   :  { %v297_v53 = vadd.f32 %v288_v50, %v281_v51 }
 0x1bf   :  { %v1719_v52 = vpop.eup %1718  ;;  %v274_v59 = vpop.permute.xlu1 %273 }
 0x1c0   :  { %v109_v54 = vmul.f32 0.6931472, %v1719_v52  ;;  %1680 = vset.pattern.permute.xlu1 %v1891_v57  ;;  %v282_v61 = vmul.f32 %v274_v59, %v1938_v2 }
 0x1c1   :  { %655 = vperm.xlu1 %1680, %v297_v53  }
 0x1c2   :  { %v113_v55 = vmax.f32 %v109_v54, 1.0  ;;  %v298_v0 = vadd.f32 %v290_v48, %v282_v61 }
 0x1c4   :  { %v117_v58 = vsel %vm69_vm4, %v113_v55, 0.0 }
 0x1c5   :  { %398 = vrot.lane.b32.xlu2 %v117_v58, %s1886_s2 }
 0x1c9   :  { %1681 = vset.pattern.permute.xlu1 %v1893_v8 }
 0x1ca   :  { %363 = vperm.xlu1 %1681, %v297_v53  }
 0x1cd   :  { %358 = vperm.xlu2 %1679, %v296_v22  }
 0x1d2   :  { %309 = vrot.lane.b32.xlu1 %v266_v63, %s1892_s7 }
 0x1d5   :  { %1682 = vset.pattern.permute.xlu2 %v1891_v57 }
 0x1d6   :  { %659 = vperm.xlu2 %1682, %v298_v0  }
 0x1de   :  { %1683 = vset.pattern.permute.xlu2 %v1893_v8 }
 0x1df   :  { %368 = vperm.xlu2 %1683, %v298_v0  }
 0x1ee   :  { %v304_v3 = vpop.permute.xlu2 %303 }
 0x1ef   :  { %315 = vxpose.xlu0.b32.start [1/4] (short) (narrow) %v304_v3, 8 }
 0x204   :  { %v648_v4 = vpop.permute.xlu2 %647 }
 0x20c   :  { %v306_v7 = vpop.permute.xlu2 %305 }
 0x20d   :  { %316 = vxpose.xlu0.b32.cont [2/4] (short) (narrow) %v306_v7, 8 }
 0x214   :  { %v2056_v57 = vpop.permute.xlu2 %394 }
 0x216   :  { %v652_v9 = vpop.permute.xlu0 %651 }
 0x21e   :  { %v308_v62 = vpop.permute.xlu0 %307 }
 0x21f   :  { %317 = vxpose.xlu0.b32.cont [3/4] (short) (narrow) %v308_v62, 8  ;;  %v2058_v15 = vpop.permute.xlu2 %398 }
 0x222   :  { %v2054_v11 = vpop.permute.xlu1 %396 }
 0x227   :  { %v359_v8 = vpop.permute.xlu2 %358 }
 0x22a   :  { %v354_v10 = vpop.permute.xlu1 %353 }
 0x230   :  { %v660_v23 = vpop.permute.xlu2 %659 }
 0x233   :  { %v656_v12 = vpop.permute.xlu1 %655 }
 0x239   :  { %v369_v50 = vpop.permute.xlu2 %368 }
 0x23c   :  { %v364_v13 = vpop.permute.xlu1 %363 }
 0x244   :  { %v310_v14 = vpop.permute.xlu1 %309 }
 0x245   :  { %318 = vxpose.xlu0.b32.end [4/4] (short) (narrow) %v310_v14, 8 }
 0x2d1   :  { %v331_v19 = vpop.trf.xlu0 }
 0x2d2   :  { %v371_v21 = vperm.slane %v331_v19, 0  ;;  %v662_v22 = vperm.slane %v331_v19, 1 }
 0x2d4   :  { %v664_v24 = vadd.f32 %v662_v22, %v652_v9  ;;  %v663_v25 = vadd.f32 %v662_v22, %v648_v4  ;;  %v374_v27 = vadd.f32 %v371_v21, %v364_v13  ;;  %v666_v28 = vadd.f32 %v662_v22, %v660_v23 }
 0x2d5   :  { %v665_v30 = vadd.f32 %v662_v22, %v656_v12  ;;  %v373_v44 = vadd.f32 %v371_v21, %v359_v8  ;;  %v372_v45 = vadd.f32 %v371_v21, %v354_v10  ;;  %v375_v53 = vadd.f32 %v371_v21, %v369_v50 }
 0x2d6   :  { %vm668_vm5 = vcmp.ge.f32.partialorder %v664_v24, 0.0  ;;  %v672_v31 = vmul.f32 0.2, %v664_v24  ;;  %vm667_vm6 = vcmp.ge.f32.partialorder %v663_v25, 0.0  ;;  %v671_v32 = vmul.f32 0.2, %v663_v25 }
 0x2d7   :  { %vm378_vm7 = vcmp.ge.f32.partialorder %v374_v27, 0.0  ;;  %v382_v33 = vmul.f32 0.2, %v374_v27  ;;  %v674_v40 = vmul.f32 0.2, %v666_v28  ;;  %vm670_vm8 = vcmp.ge.f32.partialorder %v666_v28, 0.0 }
 0x2d8   :  { %v676_v34 = vsel %vm668_vm5, %v664_v24, %v672_v31  ;;  %v675_v35 = vsel %vm667_vm6, %v663_v25, %v671_v32  ;;  %v673_v41 = vmul.f32 0.2, %v665_v30  ;;  %vm669_vm9 = vcmp.ge.f32.partialorder %v665_v30, 0.0 }
 0x2d9   :  { %v680_v36 = vmul.f32 %v676_v34, %v2056_v57  ;;  %v679_v37 = vmul.f32 %v675_v35, %v2041_v56  ;;  %v386_v38 = vsel %vm378_vm7, %v374_v27, %v382_v33  ;;  %v678_v42 = vsel %vm670_vm8, %v666_v28, %v674_v40 }
 0x2da   :  { %v406_v39 = vmul.f32 %v2054_v11, %v386_v38  ;;  %v677_v43 = vsel %vm669_vm9, %v665_v30, %v673_v41  ;;  %v682_v46 = vmul.f32 %v678_v42, %v2058_v15  ;;  %v381_v48 = vmul.f32 0.2, %v373_v44 }
 0x2db   :  { %689 = vrot.lane.b32.xlu2 %v680_v36, %s1885_s0  ;;  %687 = vrot.lane.b32.xlu1 %v679_v37, %s1885_s0  ;;  %v681_v47 = vmul.f32 %v677_v43, %v2054_v11  ;;  %v380_v49 = vmul.f32 0.2, %v372_v45  ;;  %vm377_vm10 = vcmp.ge.f32.partialorder %v373_v44, 0.0  ;;  %vm376_vm11 = vcmp.ge.f32.partialorder %v372_v45, 0.0 }
 0x2dc   :  { %416 = vrot.lane.b32.xlu0 %v406_v39, %s1885_s0  ;;  %v385_v51 = vsel %vm377_vm10, %v373_v44, %v381_v48  ;;  %v383_v58 = vmul.f32 0.2, %v375_v53  ;;  %vm379_vm12 = vcmp.ge.f32.partialorder %v375_v53, 0.0  ;;  %vm619_vm9 = vcmask 64512  }
 0x2dd   :  { %v384_v52 = vsel %vm376_vm11, %v372_v45, %v380_v49  ;;  %v405_v54 = vmul.f32 %v2056_v57, %v385_v51 }
 0x2de   :  { %v404_v55 = vmul.f32 %v2041_v56, %v384_v52  ;;  %v387_v59 = vsel %vm379_vm12, %v375_v53, %v383_v58  ;;  %vm919_vm12 = vcmask 261248  }
 0x2df   :  { %v407_v60 = vmul.f32 %v2058_v15, %v387_v59 }
 0x2e3   :  { %693 = vrot.lane.b32.xlu2 %v682_v46, %s1885_s0  ;;  %691 = vrot.lane.b32.xlu1 %v681_v47, %s1885_s0 }
 0x2eb   :  { %414 = vrot.lane.b32.xlu2 %v405_v54, %s1885_s0  ;;  %412 = vrot.lane.b32.xlu1 %v404_v55, %s1885_s0 }
 0x2f3   :  { %418 = vrot.lane.b32.xlu2 %v407_v60, %s1885_s0 }
 0x335   :  { %v690_v61 = vpop.permute.xlu2 %689 }
 0x336   :  { %v700_v63 = vsel %vm67_vm2, %v690_v61, -1e+30 }
 0x337   :  { %v706_v0 = vsel %vm428_vm13, %v700_v63, -inf }
 0x338   :  { %707 = vmax.xlane.f32.xlu2 %v706_v0 }
 0x33d   :  { %v694_v3 = vpop.permute.xlu2 %693 }
 0x33e   :  { %v702_v23 = vsel %vm69_vm4, %v694_v3, -1e+30 }
 0x33f   :  { %v712_v24 = vsel %vm428_vm13, %v702_v23, -inf }
 0x345   :  { %v415_v4 = vpop.permute.xlu2 %414 }
 0x346   :  { %v425_v7 = vsel %vm67_vm2, %v415_v4, -1e+30 }
 0x347   :  { %v432_v9 = vsel %vm428_vm13, %v425_v7, -inf }
 0x348   :  { %433 = vmax.xlane.f32.xlu2 %v432_v9 }
 0x34d   :  { %v688_v62 = vpop.permute.xlu1 %687  ;;  %v419_v10 = vpop.permute.xlu2 %418 }
 0x34e   :  { %v2084_v12 = vsel %vm69_vm4, %v419_v10, -1e+30  ;;  %v699_v13 = vsel %vm66_vm1, %v688_v62, -1e+30  ;;  %v417_v30 = vpop.permute.xlu0 %416 }
 0x34f   :  { %v438_v14 = vsel %vm428_vm13, %v2084_v12, -inf  ;;  %v703_v8 = vsel %vm428_vm13, %v699_v13, -inf  ;;  %v426_v31 = vsel %vm68_vm3, %v417_v30, -1e+30 }
 0x350   :  { %439 = vmax.xlane.f32.xlu2 %v438_v14  ;;  %704 = vmax.xlane.f32.xlu1 %v703_v8  ;;  %v435_v32 = vsel %vm428_vm13, %v426_v31, -inf }
 0x355   :  { %v692_v19 = vpop.permute.xlu1 %691 }
 0x356   :  { %v701_v21 = vsel %vm68_vm3, %v692_v19, -1e+30 }
 0x357   :  { %v709_v22 = vsel %vm428_vm13, %v701_v21, -inf }
 0x358   :  { %710 = vmax.xlane.f32.xlu1 %v709_v22 }
 0x35d   :  { %v413_v25 = vpop.permute.xlu1 %412 }
 0x35e   :  { %v424_v27 = vsel %vm66_vm1, %v413_v25, -1e+30 }
 0x35f   :  { %v429_v28 = vsel %vm428_vm13, %v424_v27, -inf }
 0x360   :  { %713 = vmax.xlane.f32.xlu1 %v712_v24 }
 0x368   :  { %430 = vmax.xlane.f32.xlu1 %v429_v28 }
 0x370   :  { %436 = vmax.xlane.f32.xlu1 %v435_v32 }
 0x3ab   :  { %v708_v35 = vpop.xlane.xlu2 %707 }
 0x3ac   :  { %v716_v37 = vsub.f32 %v700_v63, %v708_v35 }
 0x3ae   :  { %v721_v40 = vmul.f32 1.442695, %v716_v37 }
 0x3bb   :  { %v434_v50 = vpop.xlane.xlu2 %433 }
 0x3bc   :  { %v442_v53 = vsub.f32 %v425_v7, %v434_v50 }
 0x3be   :  { %v447_v54 = vmul.f32 1.442695, %v442_v53 }
 0x3c3   :  { %v705_v33 = vpop.xlane.xlu1 %704  ;;  %v440_v0 = vpop.xlane.xlu2 %439 }
 0x3c4   :  { %v715_v34 = vsub.f32 %v699_v13, %v705_v33  ;;  %v444_v14 = vsub.f32 %v2084_v12, %v440_v0 }
 0x3c6   :  { %v719_v36 = vmul.f32 1.442695, %v715_v34  ;;  %v451_v19 = vmul.f32 1.442695, %v444_v14  ;;  %v1898_v14 = vmov 32.0  }
 0x3c8   :  { %1720 = vpow2.f32 %v719_v36 }
 0x3cb   :  { %v711_v38 = vpop.xlane.xlu1 %710 }
 0x3cc   :  { %v717_v39 = vsub.f32 %v701_v21, %v711_v38 }
 0x3ce   :  { %v723_v41 = vmul.f32 1.442695, %v717_v39  ;;  %v2103_v42 = vpop.eup %1720 }
 0x3cf   :  { %731 = vrot.lane.b32.xlu1 %v2103_v42, %s1886_s2 }
 0x3d0   :  { %1722 = vpow2.f32 %v723_v41 }
 0x3d1   :  { %1724 = vpow2.f32 %v721_v40 }
 0x3d3   :  { %v714_v43 = vpop.xlane.xlu1 %713 }
 0x3d4   :  { %v718_v44 = vsub.f32 %v702_v23, %v714_v43 }
 0x3d6   :  { %v2107_v45 = vpop.eup %1722  ;;  %v725_v46 = vmul.f32 1.442695, %v718_v44 }
 0x3d7   :  { %v2109_v47 = vpop.eup %1724  ;;  %735 = vrot.lane.b32.xlu2 %v2107_v45, %s1886_s2 }
 0x3d8   :  { %1726 = vpow2.f32 %v725_v46  ;;  %733 = vrot.lane.b32.xlu1 %v2109_v47, %s1886_s2 }
 0x3db   :  { %v431_v48 = vpop.xlane.xlu1 %430 }
 0x3dc   :  { %v441_v49 = vsub.f32 %v424_v27, %v431_v48 }
 0x3de   :  { %v2115_v51 = vpop.eup %1726  ;;  %v445_v52 = vmul.f32 1.442695, %v441_v49 }
 0x3df   :  { %737 = vrot.lane.b32.xlu0 %v2115_v51, %s1886_s2 }
 0x3e0   :  { %1728 = vpow2.f32 %v445_v52 }
 0x3e1   :  { %1730 = vpow2.f32 %v447_v54 }
 0x3e3   :  { %v437_v55 = vpop.xlane.xlu1 %436 }
 0x3e4   :  { %v443_v59 = vsub.f32 %v426_v31, %v437_v55 }
 0x3e6   :  { %v2119_v58 = vpop.eup %1728  ;;  %v449_v60 = vmul.f32 1.442695, %v443_v59 }
 0x3e7   :  { %457 = vrot.lane.b32.xlu0 %v2119_v58, %s1886_s2  ;;  %v1731_v61 = vpop.eup %1730 }
 0x3e8   :  { %1732 = vpow2.f32 %v449_v60 }
 0x3e9   :  { %1734 = vpow2.f32 %v451_v19 }
 0x3ee   :  { %v2124_v63 = vpop.eup %1732 }
 0x3ef   :  { %459 = vrot.lane.b32.xlu0 %v1731_v61, %s1886_s2  ;;  %v1735_v24 = vpop.eup %1734 }
 0x3f7   :  { %461 = vrot.lane.b32.xlu0 %v2124_v63, %s1886_s2 }
 0x431   :  { %v736_v3 = vpop.permute.xlu2 %735 }
 0x432   :  { %v749_v4 = vsel %vm136_vm0, %v736_v3, 0.0  ;;  %v866_v3 = vld [vmem:[#allocation3 + $0x8] ss:$0 sm:$0xff] }
 0x433   :  { %750 = vadd.xlane.f32.xlu0 %v749_v4 }
 0x441   :  { %v732_v7 = vpop.permute.xlu1 %731 }
 0x442   :  { %v743_v9 = vsel %vm136_vm0, %v732_v7, 0.0 }
 0x443   :  { %744 = vadd.xlane.f32.xlu2 %v743_v9 }
 0x447   :  { %773 = vrot.lane.b32.xlu0 %v1984_v26, %s1894_s8 }
 0x44a   :  { %v734_v62 = vpop.permute.xlu1 %733 }
 0x44b   :  { %v746_v10 = vsel %vm136_vm0, %v734_v62, 0.0 }
 0x44c   :  { %747 = vadd.xlane.f32.xlu1 %v746_v10 }
 0x451   :  { %v738_v13 = vpop.permute.xlu0 %737 }
 0x452   :  { %v752_v26 = vsel %vm136_vm0, %v738_v13, 0.0 }
 0x459   :  { %v458_v8 = vpop.permute.xlu0 %457 }
 0x45a   :  { %v469_v21 = vsel %vm136_vm0, %v458_v8, 0.0 }
 0x45b   :  { %470 = vadd.xlane.f32.xlu2 %v469_v21 }
 0x461   :  { %v460_v22 = vpop.permute.xlu0 %459 }
 0x462   :  { %v472_v23 = vsel %vm136_vm0, %v460_v22, 0.0  ;;  %v594_v22 = vld [vmem:[#allocation3] ss:$0 sm:$0xff] }
 0x463   :  { %473 = vadd.xlane.f32.xlu2 %v472_v23  ;;  %v596_v23 = vld [vmem:[#allocation3 + $0x1] ss:$0 sm:$0xff] }
 0x465   :  { %463 = vrot.lane.b32.xlu1 %v1735_v24, %s1886_s2 }
 0x469   :  { %v462_v12 = vpop.permute.xlu0 %461 }
 0x46a   :  { %v475_v25 = vsel %vm136_vm0, %v462_v12, 0.0 }
 0x47b   :  { %771 = vrot.lane.b32.xlu2 %v1987_v29, %s1894_s8 }
 0x48f   :  { %753 = vadd.xlane.f32.xlu1 %v752_v26 }
 0x497   :  { %476 = vadd.xlane.f32.xlu1 %v475_v25 }
 0x4a6   :  { %v751_v27 = vpop.xlane.xlu0 %750 }
 0x4b6   :  { %v745_v30 = vpop.xlane.xlu2 %744 }
 0x4b7   :  { %1736 = vrcp.f32 %v745_v30 }
 0x4b9   :  { %v774_v28 = vpop.permute.xlu0 %773 }
 0x4ba   :  { %801 = vmatpush.bf16.msra.mxu3 %v774_v28 }
 0x4bd   :  { %v1737_v32 = vpop.eup %1736 }
 0x4be   :  { %v759_v34 = vmul.f32 %v1737_v32, %v2103_v42 }
 0x4bf   :  { %v748_v31 = vpop.xlane.xlu1 %747 }
 0x4c0   :  { %1738 = vrcp.f32 %v748_v31 }
 0x4c6   :  { %v1739_v33 = vpop.eup %1738 }
 0x4c7   :  { %v760_v29 = vmul.f32 %v1739_v33, %v2109_v47 }
 0x4c9   :  { %v763_v35 = vpack.c.bf16 %v760_v29, %v759_v34 }
 0x4cb   :  { %767 = vrot.lane.b32.xlu0 %v763_v35, %s1886_s2 }
 0x4ce   :  { %v471_v36 = vpop.xlane.xlu2 %470 }
 0x4cf   :  { %1740 = vrcp.f32 %v471_v36 }
 0x4d5   :  { %v1741_v40 = vpop.eup %1740 }
 0x4d6   :  { %v474_v37 = vpop.xlane.xlu2 %473  ;;  %v485_v44 = vmul.f32 %v1741_v40, %v2119_v58 }
 0x4d7   :  { %1742 = vrcp.f32 %v474_v37  ;;  %v464_v38 = vpop.permute.xlu1 %463 }
 0x4d8   :  { %v478_v39 = vsel %vm136_vm0, %v464_v38, 0.0  ;;  %1744 = vrcp.f32 %v751_v27 }
 0x4d9   :  { %479 = vadd.xlane.f32.xlu2 %v478_v39 }
 0x4dd   :  { %v1743_v41 = vpop.eup %1742 }
 0x4de   :  { %v772_v43 = vpop.permute.xlu2 %771  ;;  %v486_v46 = vmul.f32 %v1743_v41, %v1731_v61  ;;  %v1745_v48 = vpop.eup %1744 }
 0x4df   :  { %802 = vmatpush.bf16.msra.mxu3 %v772_v43  ;;  %v761_v50 = vmul.f32 %v1745_v48, %v2107_v45 }
 0x4e0   :  { %v489_v42 = vpack.c.bf16 %v486_v46, %v485_v44 }
 0x4e2   :  { %493 = vrot.lane.b32.xlu1 %v489_v42, %s1886_s2 }
 0x4ea   :  { %781 = vrot.lane.b32.xlu1 %v1968_v18, %s1895_s9 }
 0x4f1   :  { %783 = vrot.lane.b32.xlu2 %v1974_v20, %s1895_s9 }
 0x4f2   :  { %816 = vrot.lane.b32.xlu1 %v1944_v6, %s1894_s8 }
 0x4f9   :  { %884 = vrot.lane.b32.xlu2 %v866_v3, %s1896_s10 }
 0x4fa   :  { %820 = vrot.lane.b32.xlu1 %v1938_v2, %s1894_s8 }
 0x501   :  { %617 = vrot.lane.b32.xlu2 %v866_v3, %s1897_s11 }
 0x502   :  { %v754_v47 = vpop.xlane.xlu1 %753  ;;  %511 = vrot.lane.b32.xlu1 %v1964_v17, %s1886_s2 }
 0x503   :  { %1746 = vrcp.f32 %v754_v47 }
 0x509   :  { %v1747_v49 = vpop.eup %1746 }
 0x50a   :  { %515 = vrot.lane.b32.xlu1 %v1974_v20, %s1886_s2  ;;  %v762_v52 = vmul.f32 %v1747_v49, %v2115_v51  ;;  %v477_v55 = vpop.xlane.xlu1 %476 }
 0x50b   :  { %1748 = vrcp.f32 %v477_v55 }
 0x50c   :  { %v764_v53 = vpack.c.bf16 %v762_v52, %v761_v50 }
 0x50e   :  { %769 = vrot.lane.b32.xlu0 %v764_v53, %s1886_s2 }
 0x511   :  { %v1749_v59 = vpop.eup %1748 }
 0x512   :  { %v487_v0 = vmul.f32 %v1749_v59, %v2124_v63  ;;  %v867_v63 = vld [vmem:[#allocation3 + $0x9] ss:$0 sm:$0xff]  ;;  %615 = vrot.lane.b32.xlu1 %v594_v22, %s1897_s11 }
 0x51a   :  { %630 = vrot.lane.b32.xlu1 %v867_v63, %s1897_s11 }
 0x53d   :  { %v768_v54 = vpop.permute.xlu0 %767 }
 0x53e   :  { %1613 = vmatmul.msk.bf16.vlgmr.msra.gmra.mxu3 %vm136_vm0, %v768_v54 }
 0x54c   :  { %v480_v58 = vpop.xlane.xlu2 %479 }
 0x54d   :  { %1750 = vrcp.f32 %v480_v58 }
 0x54e   :  { %1752 = vrcp.f32 %v1898_v14 }
 0x553   :  { %v1751_v60 = vpop.eup %1750 }
 0x554   :  { %v494_v61 = vpop.permute.xlu1 %493  ;;  %v488_v20 = vmul.f32 %v1751_v60, %v1735_v24  ;;  %v1753_v27 = vpop.eup %1752 }
 0x555   :  { %1611 = vmatmul.msk.bf16.vlgmr.msra.gmra.mxu2 %vm136_vm0, %v494_v61  ;;  %v784_v30 = vpop.permute.xlu2 %783  ;;  %v565_v34 = vmul.f32 32.0, %v1753_v27  ;;  %vm569_vm15 = vweird.f32 %v1753_v27 }
 0x556   :  { %v490_v45 = vpack.c.bf16 %v488_v20, %v487_v0 }
 0x557   :  { %v566_v39 = vsub.f32 1.0, %v565_v34 }
 0x558   :  { %495 = vrot.lane.b32.xlu0 %v490_v45, %s1886_s2 }
 0x559   :  { %v567_v44 = vmul.f32 %v1753_v27, %v566_v39 }
 0x55b   :  { %v568_v47 = vadd.f32 %v1753_v27, %v567_v44 }
 0x55c   :  { %v782_v9 = vpop.permute.xlu1 %781 }
 0x55d   :  { %v2190_v50 = vsel %vm569_vm15, %v1753_v27, %v568_v47  ;;  %v885_v34 = vpop.permute.xlu2 %884 }
 0x560   :  { %777 = vrot.lane.b32.xlu0 %v1960_v16, %s1895_s9 }
 0x568   :  { %779 = vrot.lane.b32.xlu0 %v1964_v17, %s1895_s9 }
 0x570   :  { %814 = vrot.lane.b32.xlu0 %v1942_v5, %s1894_s8 }
 0x578   :  { %818 = vrot.lane.b32.xlu0 %v1936_v1, %s1894_s8 }
 0x580   :  { %v770_v51 = vpop.permute.xlu0 %769  ;;  %509 = vrot.lane.b32.xlu0 %v1960_v16, %s1886_s2 }
 0x581   :  { %1614 = vmatmul.msk.bf16.gmra.mxu3 %vm136_vm0, %v770_v51 }
 0x588   :  { %513 = vrot.lane.b32.xlu0 %v1968_v18, %s1886_s2  ;;  %v817_v18 = vpop.permute.xlu1 %816 }
 0x590   :  { %892 = vrot.lane.b32.xlu0 %v867_v63, %s1896_s10  ;;  %v821_v35 = vpop.permute.xlu1 %820 }
 0x598   :  { %628 = vrot.lane.b32.xlu0 %v596_v23, %s1897_s11 }
 0x5c1   :  { %v804_v16 = vpop.f32.mrf.mxu3 }
 0x5c9   :  { %v806_v62 = vpop.f32.mrf.mxu3 }
 0x5ca   :  { %v496_v17 = vpop.permute.xlu0 %495 }
 0x5cb   :  { %1612 = vmatmul.msk.bf16.gmra.mxu2 %vm136_vm0, %v496_v17 }
 0x5d2   :  { %v778_v4 = vpop.permute.xlu0 %777 }
 0x5d3   :  { %v805_v8 = vadd.f32 %v804_v16, %v778_v4 }
 0x5da   :  { %v780_v7 = vpop.permute.xlu0 %779 }
 0x5db   :  { %v807_v19 = vadd.f32 %v806_v62, %v780_v7 }
 0x5dd   :  { %v827_v12 = vadd.f32 %v817_v18, %v807_v19  ;;  %v536_v19 = vpop.f32.mrf.mxu2 }
 0x5df   :  { %v831_v32 = vsel %vm550_vm14, %v827_v12, 0.0 }
 0x5e2   :  { %v815_v10 = vpop.permute.xlu0 %814 }
 0x5e3   :  { %v826_v24 = vadd.f32 %v815_v10, %v805_v8 }
 0x5e5   :  { %v830_v28 = vsel %vm550_vm14, %v826_v24, 0.0 }
 0x5e6   :  { %v832_v36 = vadd.f32 %v831_v32, %v830_v28  ;;  %v512_v28 = vpop.permute.xlu1 %511 }
 0x5ea   :  { %v819_v26 = vpop.permute.xlu0 %818 }
 0x604   :  { %v809_v13 = vpop.f32.mrf.mxu3 }
 0x605   :  { %v810_v21 = vadd.f32 %v809_v13, %v782_v9 }
 0x607   :  { %v828_v25 = vadd.f32 %v819_v26, %v810_v21  ;;  %v510_v21 = vpop.permute.xlu0 %509 }
 0x609   :  { %v833_v33 = vsel %vm550_vm14, %v828_v25, 0.0 }
 0x60a   :  { %v834_v38 = vadd.f32 %v833_v33, %v832_v36 }
 0x60c   :  { %v811_v31 = vpop.f32.mrf.mxu3 }
 0x60d   :  { %v812_v29 = vadd.f32 %v811_v31, %v784_v30  ;;  %v537_v31 = vadd.f32 %v536_v19, %v510_v21 }
 0x60f   :  { %v829_v37 = vadd.f32 %v821_v35, %v812_v29 }
 0x611   :  { %v835_v40 = vsel %vm550_vm14, %v829_v37, 0.0 }
 0x612   :  { %v836_v41 = vadd.f32 %v835_v40, %v834_v38  ;;  %v1798_v40 = vld [vmem:[#allocation3] sm:$0xff] }
 0x614   :  { %v837_v43 = vrot.slane %v836_v41, 4 }
 0x616   :  { %v838_v46 = vadd.f32 %v837_v43, %v836_v41  ;;  %v546_v41 = vadd.f32 %v1798_v40, %v537_v31 }
 0x618   :  { %v839_v42 = vrot.slane %v838_v46, 2 }
 0x61a   :  { %v840_v48 = vadd.f32 %v839_v42, %v838_v46  ;;  %v1799_v42 = vld [vmem:[#allocation3 + $0x10] sm:$0xff] }
 0x61c   :  { %v841_v49 = vrot.slane %v840_v48, 1 }
 0x61e   :  { %v842_v52 = vadd.f32 %v841_v49, %v840_v48  ;;  %v1800_v49 = vld [vmem:[#allocation3 + $0x20] sm:$0xff] }
 0x620   :  { %v843_v53 = vmul.f32 %v842_v52, %v2190_v50 }
 0x622   :  { %v847_v54 = vsub.f32 %v829_v37, %v843_v53  ;;  %v844_v55 = vsub.f32 %v826_v24, %v843_v53  ;;  %v845_v58 = vsub.f32 %v827_v12, %v843_v53  ;;  %v846_v59 = vsub.f32 %v828_v25, %v843_v53  ;;  %v538_v24 = vpop.f32.mrf.mxu2  ;;  %v514_v12 = vpop.permute.xlu0 %513 }
 0x623   :  { %v539_v32 = vadd.f32 %v538_v24, %v512_v28 }
 0x624   :  { %v848_v60 = vmul.f32 %v844_v55, %v844_v55  ;;  %v849_v61 = vmul.f32 %v845_v58, %v845_v58  ;;  %v850_v0 = vmul.f32 %v846_v59, %v846_v59  ;;  %v851_v20 = vmul.f32 %v847_v54, %v847_v54 }
 0x625   :  { %v547_v47 = vadd.f32 %v1799_v42, %v539_v32 }
 0x626   :  { %v852_v45 = vsel %vm550_vm14, %v848_v60, 0.0  ;;  %v853_v51 = vsel %vm550_vm14, %v849_v61, 0.0  ;;  %v855_v17 = vsel %vm550_vm14, %v850_v0, 0.0  ;;  %v857_v4 = vsel %vm550_vm14, %v851_v20, 0.0 }
 0x627   :  { %v854_v63 = vadd.f32 %v853_v51, %v852_v45  ;;  %v551_v0 = vsel %vm550_vm14, %v546_v41, 0.0 }
 0x629   :  { %v856_v3 = vadd.f32 %v855_v17, %v854_v63  ;;  %v552_v63 = vsel %vm550_vm14, %v547_v47, 0.0 }
 0x62a   :  { %v893_v39 = vpop.permute.xlu0 %892 }
 0x62b   :  { %v858_v16 = vadd.f32 %v857_v4, %v856_v3  ;;  %v1801_v4 = vld [vmem:[#allocation3 + $0x30] sm:$0xff] }
 0x62d   :  { %v859_v7 = vrot.slane %v858_v16, 4 }
 0x62f   :  { %v860_v9 = vadd.f32 %v859_v7, %v858_v16 }
 0x631   :  { %v861_v62 = vrot.slane %v860_v9, 2 }
 0x633   :  { %v862_v10 = vadd.f32 %v861_v62, %v860_v9 }
 0x635   :  { %v863_v18 = vrot.slane %v862_v10, 1 }
 0x637   :  { %v864_v13 = vadd.f32 %v863_v18, %v862_v10 }
 0x639   :  { %v865_v14 = vmul.f32 %v864_v13, %v2190_v50 }
 0x63b   :  { %v868_v8 = vadd.f32 1e-05, %v865_v14 }
 0x63d   :  { %1754 = vrsqrt.f32 %v868_v8  ;;  %vm875_vm6 = vweird.f32 %v868_v8 }
 0x643   :  { %v1755_v22 = vpop.eup %1754 }
 0x644   :  { %v870_v23 = vmul.f32 %v1755_v22, %v868_v8  ;;  %vm876_vm5 = vweird.f32 %v1755_v22 }
 0x645   :  { %vm877_vm7 = vmor %vm875_vm6, %vm876_vm5 }
 0x646   :  { %v871_v26 = vmul.f32 %v1755_v22, %v870_v23 }
 0x648   :  { %v872_v25 = vmul.f32 0.5, %v871_v26 }
 0x64a   :  { %v873_v27 = vsub.f32 1.5, %v872_v25 }
 0x64c   :  { %v874_v30 = vmul.f32 %v1755_v22, %v873_v27 }
 0x64e   :  { %v541_v33 = vpop.f32.mrf.mxu2  ;;  %v878_v29 = vsel %vm877_vm7, %v1755_v22, %v874_v30 }
 0x64f   :  { %v542_v35 = vadd.f32 %v541_v33, %v514_v12  ;;  %v881_v36 = vmul.f32 %v878_v29, %v846_v59  ;;  %v880_v37 = vmul.f32 %v878_v29, %v845_v58  ;;  %v879_v38 = vmul.f32 %v878_v29, %v844_v55  ;;  %v516_v55 = vpop.permute.xlu1 %515 }
 0x650   :  { %v882_v48 = vmul.f32 %v878_v29, %v847_v54  ;;  %v553_v54 = vadd.f32 %v552_v63, %v551_v0  ;;  %v618_v0 = vpop.permute.xlu2 %617 }
 0x651   :  { %v889_v43 = vmul.f32 %v885_v34, %v881_v36  ;;  %v888_v44 = vmul.f32 %v885_v34, %v880_v37  ;;  %v887_v46 = vmul.f32 %v885_v34, %v879_v38  ;;  %v548_v52 = vadd.f32 %v1800_v49, %v542_v35 }
 0x652   :  { %v890_v51 = vmul.f32 %v885_v34, %v882_v48 }
 0x653   :  { %v897_v53 = vadd.f32 %v893_v39, %v889_v43  ;;  %v896_v60 = vadd.f32 %v893_v39, %v888_v44  ;;  %v895_v61 = vadd.f32 %v893_v39, %v887_v46  ;;  %v554_v17 = vsel %vm550_vm14, %v548_v52, 0.0 }
 0x654   :  { %v555_v7 = vadd.f32 %v554_v17, %v553_v54  ;;  %v898_v9 = vadd.f32 %v893_v39, %v890_v51 }
 0x655   :  { %v901_v20 = vmax.f32 %v897_v53, 0.0  ;;  %v900_v59 = vmax.f32 %v896_v60, 0.0  ;;  %v899_v58 = vmax.f32 %v895_v61, 0.0  ;;  %v1636_v60 = vld [vmem:[#allocation7 + $0x8] sm:$0xff] }
 0x656   :  { %v543_v45 = vpop.f32.mrf.mxu2  ;;  %v902_v13 = vmax.f32 %v898_v9, 0.0  ;;  %958 = vmatpush.bf16.msrb.mxu0 %v1636_v60  ;;  %v2214_v9 = vld [vmem:[#allocation3 + $0x8] sm:$0xff] }
 0x657   :  { %v544_v3 = vadd.f32 %v543_v45, %v516_v55  ;;  %911 = vrot.lane.b32.xlu1 %v901_v20, %s1883_s25  ;;  %909 = vrot.lane.b32.xlu0 %v900_v59, %s1883_s25  ;;  %v616_v48 = vpop.permute.xlu1 %615  ;;  %v629_v59 = vpop.permute.xlu0 %628 }
 0x658   :  { %907 = vrot.lane.b32.xlu2 %v899_v58, %s1883_s25 }
 0x659   :  { %v549_v16 = vadd.f32 %v1801_v4, %v544_v3 }
 0x65b   :  { %v556_v62 = vsel %vm550_vm14, %v549_v16, 0.0 }
 0x65c   :  { %v557_v10 = vadd.f32 %v556_v62, %v555_v7  ;;  %v2216_v62 = vld [vmem:[#allocation3 + $0x18] sm:$0xff] }
 0x65e   :  { %v558_v18 = vrot.slane %v557_v10, 4 }
 0x65f   :  { %v631_v58 = vpop.permute.xlu1 %630 }
 0x660   :  { %v559_v14 = vadd.f32 %v558_v18, %v557_v10  ;;  %913 = vrot.lane.b32.xlu2 %v902_v13, %s1883_s25  ;;  %v632_v3 = vsel %vm619_vm9, %v629_v59, %v631_v58  ;;  %v1635_v10 = vld [vmem:[#allocation7] sm:$0xff]  ;;  %v1684_v18 = vpack.i.bf16 %v2214_v9, %v2216_v62 }
 0x661   :  { %959 = vmatpush.bf16.msrb.mxu0 %v1635_v10 }
 0x662   :  { %v560_v8 = vrot.slane %v559_v14, 2  ;;  %1685 = vrot.lane.b32.xlu0 %v1684_v18, %s1887_s30  ;;  %v1902_v18 = vmov 40  }
 0x663   :  { %1689 = vset.pattern.permute.xlu0 %v1902_v18  ;;  %1690 = vset.pattern.permute.xlu1 %v1902_v18 }
 0x664   :  { %v561_v19 = vadd.f32 %v560_v8, %v559_v14 }
 0x666   :  { %v562_v21 = vrot.slane %v561_v19, 1 }
 0x668   :  { %v563_v22 = vadd.f32 %v562_v21, %v561_v19 }
 0x66a   :  { %v571_v23 = vmul.f32 %v2190_v50, %v563_v22 }
 0x66c   :  { %v572_v24 = vsub.f32 %v546_v41, %v571_v23  ;;  %v573_v26 = vsub.f32 %v547_v47, %v571_v23  ;;  %v574_v12 = vsub.f32 %v548_v52, %v571_v23  ;;  %v575_v25 = vsub.f32 %v549_v16, %v571_v23 }
 0x66e   :  { %v576_v27 = vmul.f32 %v572_v24, %v572_v24  ;;  %v577_v28 = vmul.f32 %v573_v26, %v573_v26  ;;  %v578_v30 = vmul.f32 %v574_v12, %v574_v12  ;;  %v579_v31 = vmul.f32 %v575_v25, %v575_v25 }
 0x670   :  { %v580_v32 = vsel %vm550_vm14, %v576_v27, 0.0  ;;  %v581_v33 = vsel %vm550_vm14, %v577_v28, 0.0  ;;  %v583_v29 = vsel %vm550_vm14, %v578_v30, 0.0  ;;  %v585_v36 = vsel %vm550_vm14, %v579_v31, 0.0 }
 0x671   :  { %v582_v34 = vadd.f32 %v581_v33, %v580_v32 }
 0x673   :  { %v584_v35 = vadd.f32 %v583_v29, %v582_v34 }
 0x675   :  { %v586_v37 = vadd.f32 %v585_v36, %v584_v35 }
 0x677   :  { %v587_v38 = vrot.slane %v586_v37, 4 }
 0x679   :  { %v588_v39 = vadd.f32 %v587_v38, %v586_v37 }
 0x67b   :  { %v589_v40 = vrot.slane %v588_v39, 2 }
 0x67d   :  { %v590_v41 = vadd.f32 %v589_v40, %v588_v39 }
 0x67f   :  { %v591_v43 = vrot.slane %v590_v41, 1 }
 0x681   :  { %v592_v44 = vadd.f32 %v591_v43, %v590_v41 }
 0x683   :  { %v593_v46 = vmul.f32 %v592_v44, %v2190_v50  ;;  %v620_v50 = vsel %vm619_vm9, %v616_v48, %v618_v0 }
 0x685   :  { %v598_v42 = vadd.f32 1e-05, %v593_v46 }
 0x687   :  { %1756 = vrsqrt.f32 %v598_v42  ;;  %vm605_vm10 = vweird.f32 %v598_v42 }
 0x68d   :  { %v1757_v47 = vpop.eup %1756 }
 0x68e   :  { %v600_v49 = vmul.f32 %v1757_v47, %v598_v42  ;;  %vm606_vm8 = vweird.f32 %v1757_v47 }
 0x68f   :  { %vm607_vm11 = vmor %vm605_vm10, %vm606_vm8 }
 0x690   :  { %v601_v52 = vmul.f32 %v1757_v47, %v600_v49 }
 0x692   :  { %v602_v53 = vmul.f32 0.5, %v601_v52 }
 0x694   :  { %v603_v61 = vsub.f32 1.5, %v602_v53 }
 0x696   :  { %v604_v20 = vmul.f32 %v1757_v47, %v603_v61 }
 0x698   :  { %v608_v55 = vsel %vm607_vm11, %v1757_v47, %v604_v20 }
 0x699   :  { %v612_v45 = vmul.f32 %v608_v55, %v575_v25  ;;  %v609_v51 = vmul.f32 %v608_v55, %v572_v24  ;;  %v610_v63 = vmul.f32 %v608_v55, %v573_v26  ;;  %v611_v17 = vmul.f32 %v608_v55, %v574_v12 }
 0x69b   :  { %v622_v54 = vmul.f32 %v620_v50, %v609_v51  ;;  %v623_v4 = vmul.f32 %v620_v50, %v610_v63  ;;  %v624_v16 = vmul.f32 %v620_v50, %v611_v17  ;;  %v625_v7 = vmul.f32 %v620_v50, %v612_v45 }
 0x69d   :  { %v634_v13 = vadd.f32 %v632_v3, %v622_v54  ;;  %v635_v14 = vadd.f32 %v632_v3, %v623_v4  ;;  %v636_v8 = vadd.f32 %v632_v3, %v624_v16  ;;  %v637_v19 = vadd.f32 %v632_v3, %v625_v7 }
 0x69f   :  { %v638_v21 = vmax.f32 %v634_v13, 0.0  ;;  %v639_v22 = vmax.f32 %v635_v14, 0.0  ;;  %v640_v23 = vmax.f32 %v636_v8, 0.0  ;;  %v641_v24 = vmax.f32 %v637_v19, 0.0  ;;  %v1036_v8 = vld [vmem:[#allocation3 + $0x28] sm:$0xff] }
 0x6a1   :  { %642 = vst.msk [vmem:[#allocation2] sm:$0xff] %vm550_vm14, %v638_v21 }
 0x6a2   :  { %643 = vst.msk [vmem:[#allocation2 + $0x8] sm:$0xff] %vm550_vm14, %v639_v22 }
 0x6a3   :  { %644 = vst.msk [vmem:[#allocation2 + $0x10] sm:$0xff] %vm550_vm14, %v640_v23  ;;  %v1903_v23 = vmov 41  }
 0x6a4   :  { %645 = vst.msk [vmem:[#allocation2 + $0x18] sm:$0xff] %vm550_vm14, %v641_v24  ;;  %1691 = vset.pattern.permute.xlu2 %v1903_v23 }
 0x6b2   :  { %v908_v26 = vpop.permute.xlu2 %907 }
 0x6b3   :  { %920 = vst.msk [vmem:[#allocation2] sm:$0xff] %vm919_vm12, %v908_v26 }
 0x6ba   :  { %v914_v12 = vpop.permute.xlu2 %913  ;;  %v924_v28 = vld [vmem:[#allocation2] sm:$0xff] }
 0x6bb   :  { %923 = vst.msk [vmem:[#allocation2 + $0x18] sm:$0xff] %vm919_vm12, %v914_v12 }
 0x6c2   :  { %v927_v33 = vld [vmem:[#allocation2 + $0x18] sm:$0xff] }
 0x6c9   :  { %v910_v25 = vpop.permute.xlu0 %909  ;;  %v912_v27 = vpop.permute.xlu1 %911 }
 0x6ca   :  { %921 = vst.msk [vmem:[#allocation2 + $0x8] sm:$0xff] %vm919_vm12, %v910_v25 }
 0x6cb   :  { %922 = vst.msk [vmem:[#allocation2 + $0x10] sm:$0xff] %vm919_vm12, %v912_v27 }
 0x6d1   :  { %v925_v30 = vld [vmem:[#allocation2 + $0x8] sm:$0xff] }
 0x6d2   :  { %v932_v31 = vpack.c.bf16 %v925_v30, %v924_v28  ;;  %v926_v32 = vld [vmem:[#allocation2 + $0x10] sm:$0xff] }
 0x6d3   :  { %v933_v34 = vpack.c.bf16 %v927_v33, %v926_v32 }
 0x6d4   :  { %1623 = vmatmul.msk.bf16.vlgmr.msrb.gmra.mxu0 %vm136_vm0, %v932_v31  ;;  %v1686_v29 = vpop.permute.xlu0 %1685 }
 0x6d5   :  { %v1687_v35 = vunpack.i.l.bf16 %v1686_v29  ;;  %v1688_v36 = vunpack.i.h.bf16 %v1686_v29 }
 0x6d7   :  { %1007 = vmatpush.msrb.mxu1 %v1687_v35 }
 0x6d9   :  { %1008 = vmatpush.msrb.mxu1 %v1688_v36 }
 0x6e4   :  { %1624 = vmatmul.msk.bf16.gmra.mxu0 %vm136_vm0, %v933_v34  ;;  %v1037_v34 = vld [vmem:[#allocation3 + $0x38] sm:$0xff] }
 0x751   :  { %v2227_v37 = vpop.f32.mrf.mxu0 }
 0x752   :  { %1625 = vmatmul.msk.f32.vlgmr.msrb.gmra.mxu1 %vm550_vm14, %v2227_v37  ;;  %v1158_v47 = vpack.c.bf16 %v2227_v37, %v2227_v37 }
 0x754   :  { %v1295_v52 = vunpack.c.l.b16 %v1158_v47 }
 0x759   :  { %v2231_v38 = vpop.f32.mrf.mxu0 }
 0x75a   :  { %1626 = vmatmul.msk.f32.gmra.mxu1 %vm550_vm14, %v2231_v38  ;;  %v1159_v44 = vpack.c.bf16 %v2231_v38, %v2231_v38 }
 0x75c   :  { %v1296_v49 = vunpack.c.l.b16 %v1159_v44 }
 0x75e   :  { %v2254_v53 = vpack.c.b16 %v1296_v49, %v1295_v52 }
 0x761   :  { %v2235_v39 = vpop.f32.mrf.mxu0 }
 0x762   :  { %1627 = vmatmul.msk.f32.gmra.mxu1 %vm550_vm14, %v2235_v39  ;;  %v1160_v40 = vpack.c.bf16 %v2235_v39, %v2235_v39 }
 0x764   :  { %v1297_v46 = vunpack.c.l.b16 %v1160_v40 }
 0x769   :  { %v2241_v41 = vpop.f32.mrf.mxu0 }
 0x76a   :  { %v1161_v43 = vpack.c.bf16 %v2241_v41, %v2241_v41  ;;  %1628 = vmatmul.msk.f32.gmra.mxu1 %vm550_vm14, %v2241_v41 }
 0x76c   :  { %v1298_v42 = vunpack.c.l.b16 %v1161_v43 }
 0x76e   :  { %v2251_v48 = vpack.c.b16 %v1298_v42, %v1297_v46 }
 0x770   :  { %1327 = vmatpush.bf16.msrb.mxu2 %v2251_v48 }
 0x774   :  { %1328 = vmatpush.bf16.msrb.mxu2 %v2254_v53 }
 0x7cf   :  { %v2257_v60 = vpop.f32.mrf.mxu1 }
 0x7d0   :  { %v1022_v61 = vmul.f32 0.5, %v2257_v60  ;;  %1062 = vrot.lane.b32.xlu2 %v2257_v60, %s1885_s0 }
 0x7d2   :  { %v1026_v0 = vmul.f32 1.442695, %v1022_v61 }
 0x7d4   :  { %1758 = vpow2.f32 %v1026_v0 }
 0x7d7   :  { %v2262_v20 = vpop.f32.mrf.mxu1 }
 0x7d8   :  { %v1023_v59 = vmul.f32 0.5, %v2262_v20 }
 0x7da   :  { %v1759_v58 = vpop.eup %1758  ;;  %v1028_v55 = vmul.f32 1.442695, %v1023_v59 }
 0x7db   :  { %1042 = vrot.lane.b32.xlu1 %v1759_v58, %s1899_s12 }
 0x7dc   :  { %1760 = vpow2.f32 %v1028_v55 }
 0x7df   :  { %v2265_v50 = vpop.f32.mrf.mxu1 }
 0x7e0   :  { %v1024_v45 = vmul.f32 0.5, %v2265_v50  ;;  %1066 = vrot.lane.b32.xlu0 %v2265_v50, %s1885_s0 }
 0x7e2   :  { %v1030_v51 = vmul.f32 1.442695, %v1024_v45  ;;  %v1761_v63 = vpop.eup %1760 }
 0x7e3   :  { %1064 = vrot.lane.b32.xlu1 %v2262_v20, %s1885_s0 }
 0x7e4   :  { %1762 = vpow2.f32 %v1030_v51 }
 0x7e7   :  { %v2272_v17 = vpop.f32.mrf.mxu1 }
 0x7e8   :  { %v1025_v3 = vmul.f32 0.5, %v2272_v17  ;;  %1044 = vrot.lane.b32.xlu0 %v1761_v63, %s1899_s12 }
 0x7ea   :  { %v1763_v54 = vpop.eup %1762  ;;  %v1032_v4 = vmul.f32 1.442695, %v1025_v3 }
 0x7eb   :  { %1046 = vrot.lane.b32.xlu2 %v1763_v54, %s1899_s12 }
 0x7ec   :  { %1764 = vpow2.f32 %v1032_v4 }
 0x7f0   :  { %1078 = vrot.lane.b32.xlu0 %v1759_v58, %s1900_s13 }
 0x7f2   :  { %v1765_v16 = vpop.eup %1764 }
 0x7f3   :  { %1068 = vrot.lane.b32.xlu2 %v2272_v17, %s1885_s0  ;;  %1048 = vrot.lane.b32.xlu1 %v1765_v16, %s1899_s12 }
 0x7f8   :  { %1096 = vrot.lane.b32.xlu0 %v2262_v20, %s1901_s14 }
 0x7fb   :  { %1094 = vrot.lane.b32.xlu2 %v2257_v60, %s1901_s14  ;;  %1080 = vrot.lane.b32.xlu1 %v1761_v63, %s1900_s13 }
 0x803   :  { %1084 = vrot.lane.b32.xlu2 %v1765_v16, %s1900_s13  ;;  %1082 = vrot.lane.b32.xlu1 %v1763_v54, %s1900_s13 }
 0x80b   :  { %1100 = vrot.lane.b32.xlu2 %v2272_v17, %s1901_s14  ;;  %1098 = vrot.lane.b32.xlu1 %v2265_v50, %s1901_s14 }
 0x82a   :  { %v1063_v7 = vpop.permute.xlu2 %1062 }
 0x845   :  { %v1047_v10 = vpop.permute.xlu2 %1046 }
 0x846   :  { %v1056_v22 = vmul.f32 %v1047_v10, %v1036_v8 }
 0x84d   :  { %v1069_v13 = vpop.permute.xlu2 %1068  ;;  %v1043_v14 = vpop.permute.xlu1 %1042 }
 0x84e   :  { %v1054_v19 = vmul.f32 %v1043_v14, %v2214_v9 }
 0x850   :  { %v1074_v21 = vadd.f32 %v1063_v7, %v1054_v19 }
 0x852   :  { %v1067_v24 = vpop.permute.xlu0 %1066  ;;  %1114 = vrot.lane.b32.xlu0 %v1074_v21, %s1886_s2 }
 0x853   :  { %v1076_v26 = vadd.f32 %v1067_v24, %v1056_v22 }
 0x855   :  { %1118 = vrot.lane.b32.xlu1 %v1076_v26, %s1886_s2  ;;  %v1095_v12 = vpop.permute.xlu2 %1094  ;;  %v1065_v28 = vpop.permute.xlu1 %1064 }
 0x85a   :  { %v1045_v25 = vpop.permute.xlu0 %1044 }
 0x85b   :  { %v1055_v27 = vmul.f32 %v1045_v25, %v2216_v62 }
 0x85d   :  { %v1075_v30 = vadd.f32 %v1065_v28, %v1055_v27  ;;  %v1085_v31 = vpop.permute.xlu2 %1084 }
 0x85e   :  { %v1093_v44 = vmul.f32 %v1085_v31, %v1037_v34 }
 0x85f   :  { %1116 = vrot.lane.b32.xlu0 %v1075_v30, %s1886_s2 }
 0x862   :  { %v1079_v32 = vpop.permute.xlu0 %1078 }
 0x863   :  { %v1090_v33 = vmul.f32 %v1079_v32, %v2214_v9 }
 0x865   :  { %v1106_v29 = vadd.f32 %v1095_v12, %v1090_v33  ;;  %v1049_v35 = vpop.permute.xlu1 %1048  ;;  %v1101_v43 = vpop.permute.xlu2 %1100 }
 0x866   :  { %v1057_v36 = vmul.f32 %v1049_v35, %v1037_v34  ;;  %v1109_v46 = vadd.f32 %v1101_v43, %v1093_v44 }
 0x867   :  { %1164 = vperm.xlu0 %1689, %v1106_v29  }
 0x868   :  { %v1077_v40 = vadd.f32 %v1069_v13, %v1057_v36 }
 0x86a   :  { %1120 = vrot.lane.b32.xlu2 %v1077_v40, %s1886_s2  ;;  %v1097_v49 = vpop.permute.xlu0 %1096 }
 0x86d   :  { %v1081_v42 = vpop.permute.xlu1 %1080 }
 0x86e   :  { %v1091_v47 = vmul.f32 %v1081_v42, %v2216_v62 }
 0x86f   :  { %1179 = vperm.xlu0 %1689, %v1109_v46  }
 0x870   :  { %v1107_v52 = vadd.f32 %v1097_v49, %v1091_v47 }
 0x872   :  { %1341 = vperm.xlu2 %1691, %v1106_v29   ;;  %1169 = vperm.xlu1 %1690, %v1107_v52  }
 0x875   :  { %v1083_v9 = vpop.permute.xlu1 %1082 }
 0x876   :  { %v1092_v61 = vmul.f32 %v1083_v9, %v1036_v8 }
 0x87a   :  { %1692 = vset.pattern.permute.xlu1 %v1903_v23  ;;  %1693 = vset.pattern.permute.xlu2 %v1902_v18 }
 0x87b   :  { %1345 = vperm.xlu1 %1692, %v1107_v52  }
 0x87d   :  { %v1099_v0 = vpop.permute.xlu1 %1098 }
 0x87e   :  { %v1108_v59 = vadd.f32 %v1099_v0, %v1092_v61 }
 0x880   :  { %1174 = vperm.xlu2 %1693, %v1108_v59  }
 0x883   :  { %1349 = vperm.xlu1 %1692, %v1108_v59  }
 0x888   :  { %1694 = vset.pattern.permute.xlu2 %v1903_v23 }
 0x889   :  { %1353 = vperm.xlu2 %1694, %v1109_v46  }
 0x8c4   :  { %v1115_v58 = vpop.permute.xlu0 %1114  ;;  %v1121_v45 = vpop.permute.xlu2 %1120 }
 0x8c5   :  { %1126 = vxpose.xlu0.b32.start [1/4] (short) (narrow) %v1115_v58, 8 }
 0x8c7   :  { %v1119_v62 = vpop.permute.xlu1 %1118 }
 0x8cc   :  { %v1342_v7 = vpop.permute.xlu2 %1341 }
 0x8d1   :  { %v1117_v55 = vpop.permute.xlu0 %1116 }
 0x8d2   :  { %1127 = vxpose.xlu0.b32.cont [2/4] (short) (narrow) %v1117_v55, 8 }
 0x8d9   :  { %v1165_v51 = vpop.permute.xlu0 %1164 }
 0x8da   :  { %1128 = vxpose.xlu0.b32.cont [3/4] (short) (narrow) %v1119_v62, 8  ;;  %v1175_v27 = vpop.permute.xlu2 %1174 }
 0x8e1   :  { %v1180_v63 = vpop.permute.xlu0 %1179 }
 0x8e2   :  { %1129 = vxpose.xlu0.b32.end [4/4] (short) (narrow) %v1121_v45, 8 }
 0x8e3   :  { %v1354_v36 = vpop.permute.xlu2 %1353 }
 0x8e4   :  { %v1170_v3 = vpop.permute.xlu1 %1169 }
 0x8ed   :  { %v1346_v10 = vpop.permute.xlu1 %1345 }
 0x8f5   :  { %v1350_v40 = vpop.permute.xlu1 %1349 }
 0x949   :  { %1695 = vset.pattern.permute.xlu0 %v1903_v23 }
 0x96e   :  { %v1142_v54 = vpop.trf.xlu0 }
 0x96f   :  { %v1182_v4 = vperm.slane %v1142_v54, 0  ;;  %v1356_v16 = vperm.slane %v1142_v54, 1 }
 0x971   :  { %v1183_v18 = vadd.f32 %v1182_v4, %v1165_v51  ;;  %v1184_v13 = vadd.f32 %v1182_v4, %v1170_v3  ;;  %v1357_v14 = vadd.f32 %v1356_v16, %v1342_v7  ;;  %v1358_v8 = vadd.f32 %v1356_v16, %v1346_v10 }
 0x972   :  { %v1185_v28 = vadd.f32 %v1182_v4, %v1175_v27  ;;  %v1186_v32 = vadd.f32 %v1182_v4, %v1180_v63  ;;  %v1359_v43 = vadd.f32 %v1356_v16, %v1350_v40  ;;  %v1360_v42 = vadd.f32 %v1356_v16, %v1354_v36 }
 0x973   :  { %vm1187_vm14 = vcmp.ge.f32.partialorder %v1183_v18, 0.0  ;;  %v1191_v19 = vmul.f32 0.2, %v1183_v18  ;;  %vm1188_vm15 = vcmp.ge.f32.partialorder %v1184_v13, 0.0  ;;  %v1192_v21 = vmul.f32 0.2, %v1184_v13 }
 0x974   :  { %v1365_v12 = vmul.f32 0.2, %v1357_v14  ;;  %v1366_v25 = vmul.f32 0.2, %v1358_v8  ;;  %vm1361_vm5 = vcmp.ge.f32.partialorder %v1357_v14, 0.0  ;;  %vm1362_vm6 = vcmp.ge.f32.partialorder %v1358_v8, 0.0 }
 0x975   :  { %v1195_v22 = vsel %vm1187_vm14, %v1183_v18, %v1191_v19  ;;  %v1196_v24 = vsel %vm1188_vm15, %v1184_v13, %v1192_v21  ;;  %v1193_v29 = vmul.f32 0.2, %v1185_v28  ;;  %v1194_v35 = vmul.f32 0.2, %v1186_v32 }
 0x976   :  { %v1199_v23 = vmul.f32 %v1195_v22, %v2041_v56  ;;  %v1200_v26 = vmul.f32 %v1196_v24, %v2056_v57  ;;  %v1369_v30 = vsel %vm1361_vm5, %v1357_v14, %v1365_v12  ;;  %v1370_v31 = vsel %vm1362_vm6, %v1358_v8, %v1366_v25 }
 0x977   :  { %v1373_v33 = vmul.f32 %v1369_v30, %v2041_v56  ;;  %v1374_v34 = vmul.f32 %v1370_v31, %v2056_v57  ;;  %vm1189_vm7 = vcmp.ge.f32.partialorder %v1185_v28, 0.0  ;;  %vm1190_vm8 = vcmp.ge.f32.partialorder %v1186_v32, 0.0 }
 0x978   :  { %1207 = vrot.lane.b32.xlu1 %v1199_v23, %s1885_s0  ;;  %1209 = vrot.lane.b32.xlu2 %v1200_v26, %s1885_s0  ;;  %v1197_v44 = vsel %vm1189_vm7, %v1185_v28, %v1193_v29  ;;  %v1198_v46 = vsel %vm1190_vm8, %v1186_v32, %v1194_v35  ;;  %v1368_v49 = vmul.f32 0.2, %v1360_v42  ;;  %v1367_v57 = vmul.f32 0.2, %v1359_v43 }
 0x979   :  { %v1201_v47 = vmul.f32 %v1197_v44, %v2054_v11  ;;  %v1202_v56 = vmul.f32 %v1198_v46, %v2058_v15  ;;  %vm1364_vm10 = vcmp.ge.f32.partialorder %v1360_v42, 0.0  ;;  %vm1363_vm11 = vcmp.ge.f32.partialorder %v1359_v43, 0.0 }
 0x97a   :  { %v1372_v52 = vsel %vm1364_vm10, %v1360_v42, %v1368_v49  ;;  %v1371_v9 = vsel %vm1363_vm11, %v1359_v43, %v1367_v57 }
 0x97b   :  { %v1376_v61 = vmul.f32 %v1372_v52, %v2058_v15  ;;  %v1375_v0 = vmul.f32 %v1371_v9, %v2054_v11 }
 0x980   :  { %1381 = vrot.lane.b32.xlu1 %v1373_v33, %s1885_s0  ;;  %1383 = vrot.lane.b32.xlu2 %v1374_v34, %s1885_s0 }
 0x988   :  { %1211 = vrot.lane.b32.xlu1 %v1201_v47, %s1885_s0  ;;  %1213 = vrot.lane.b32.xlu2 %v1202_v56, %s1885_s0 }
 0x990   :  { %1387 = vrot.lane.b32.xlu2 %v1376_v61, %s1885_s0  ;;  %1385 = vrot.lane.b32.xlu1 %v1375_v0, %s1885_s0 }
 0x9d2   :  { %v1210_v59 = vpop.permute.xlu2 %1209 }
 0x9d3   :  { %v1220_v58 = vsel %vm67_vm2, %v1210_v59, -1e+30 }
 0x9d4   :  { %v1226_v55 = vsel %vm428_vm13, %v1220_v58, -inf }
 0x9d5   :  { %1227 = vmax.xlane.f32.xlu2 %v1226_v55 }
 0x9da   :  { %v1384_v62 = vpop.permute.xlu2 %1383 }
 0x9db   :  { %v1394_v11 = vsel %vm67_vm2, %v1384_v62, -1e+30 }
 0x9dc   :  { %v1400_v54 = vsel %vm428_vm13, %v1394_v11, -inf }
 0x9e2   :  { %v1214_v4 = vpop.permute.xlu2 %1213 }
 0x9e3   :  { %v1222_v7 = vsel %vm69_vm4, %v1214_v4, -1e+30 }
 0x9e4   :  { %v1232_v6 = vsel %vm428_vm13, %v1222_v7, -inf }
 0x9ea   :  { %v1208_v45 = vpop.permute.xlu1 %1207  ;;  %v1388_v5 = vpop.permute.xlu2 %1387 }
 0x9eb   :  { %v1219_v51 = vsel %vm66_vm1, %v1208_v45, -1e+30  ;;  %v1396_v14 = vsel %vm69_vm4, %v1388_v5, -1e+30 }
 0x9ec   :  { %v1223_v15 = vsel %vm428_vm13, %v1219_v51, -inf  ;;  %v1406_v21 = vsel %vm428_vm13, %v1396_v14, -inf }
 0x9ed   :  { %1224 = vmax.xlane.f32.xlu1 %v1223_v15 }
 0x9f2   :  { %v1382_v63 = vpop.permute.xlu1 %1381 }
 0x9f3   :  { %v1393_v3 = vsel %vm66_vm1, %v1382_v63, -1e+30  ;;  %vm1586_vm1 = vcmask 97360  }
 0x9f4   :  { %v1397_v16 = vsel %vm428_vm13, %v1393_v3, -inf }
 0x9f5   :  { %1401 = vmax.xlane.f32.xlu1 %v1400_v54  ;;  %1398 = vmax.xlane.f32.xlu0 %v1397_v16 }
 0x9fa   :  { %v1212_v10 = vpop.permute.xlu1 %1211 }
 0x9fb   :  { %v1221_v18 = vsel %vm68_vm3, %v1212_v10, -1e+30 }
 0x9fc   :  { %v1229_v13 = vsel %vm428_vm13, %v1221_v18, -inf }
 0x9fd   :  { %1233 = vmax.xlane.f32.xlu1 %v1232_v6  ;;  %1230 = vmax.xlane.f32.xlu2 %v1229_v13 }
 0xa02   :  { %v1386_v8 = vpop.permute.xlu1 %1385 }
 0xa03   :  { %v1395_v19 = vsel %vm68_vm3, %v1386_v8, -1e+30 }
 0xa04   :  { %v1403_v22 = vsel %vm428_vm13, %v1395_v19, -inf }
 0xa05   :  { %1407 = vmax.xlane.f32.xlu1 %v1406_v21  ;;  %1404 = vmax.xlane.f32.xlu2 %v1403_v22 }
 0xa48   :  { %v1228_v24 = vpop.xlane.xlu2 %1227 }
 0xa49   :  { %v1236_v23 = vsub.f32 %v1220_v58, %v1228_v24 }
 0xa4b   :  { %v1241_v26 = vmul.f32 1.442695, %v1236_v23 }
 0xa4d   :  { %1766 = vpow2.f32 %v1241_v26 }
 0xa53   :  { %v2329_v12 = vpop.eup %1766 }
 0xa54   :  { %1253 = vrot.lane.b32.xlu1 %v2329_v12, %s1886_s2 }
 0xa60   :  { %v1225_v2 = vpop.xlane.xlu1 %1224 }
 0xa61   :  { %v1235_v25 = vsub.f32 %v1219_v51, %v1225_v2 }
 0xa63   :  { %v1239_v27 = vmul.f32 1.442695, %v1235_v25 }
 0xa65   :  { %1768 = vpow2.f32 %v1239_v27 }
 0xa68   :  { %v1399_v1 = vpop.xlane.xlu0 %1398  ;;  %v1402_v28 = vpop.xlane.xlu1 %1401 }
 0xa69   :  { %v1409_v30 = vsub.f32 %v1393_v3, %v1399_v1  ;;  %v1410_v31 = vsub.f32 %v1394_v11, %v1402_v28 }
 0xa6b   :  { %v2333_v32 = vpop.eup %1768  ;;  %v1413_v33 = vmul.f32 1.442695, %v1409_v30  ;;  %v1415_v34 = vmul.f32 1.442695, %v1410_v31 }
 0xa6c   :  { %1251 = vrot.lane.b32.xlu2 %v2333_v32, %s1886_s2 }
 0xa6d   :  { %1770 = vpow2.f32 %v1413_v33 }
 0xa6e   :  { %1772 = vpow2.f32 %v1415_v34 }
 0xa70   :  { %v1231_v29 = vpop.xlane.xlu2 %1230  ;;  %v1234_v35 = vpop.xlane.xlu1 %1233 }
 0xa71   :  { %v1237_v36 = vsub.f32 %v1221_v18, %v1231_v29  ;;  %v1238_v40 = vsub.f32 %v1222_v7, %v1234_v35 }
 0xa73   :  { %v2337_v43 = vpop.eup %1770  ;;  %v1243_v44 = vmul.f32 1.442695, %v1237_v36  ;;  %v1245_v46 = vmul.f32 1.442695, %v1238_v40 }
 0xa74   :  { %v2339_v42 = vpop.eup %1772  ;;  %1425 = vrot.lane.b32.xlu2 %v2337_v43, %s1886_s2 }
 0xa75   :  { %1774 = vpow2.f32 %v1243_v44  ;;  %1427 = vrot.lane.b32.xlu1 %v2339_v42, %s1886_s2 }
 0xa76   :  { %1776 = vpow2.f32 %v1245_v46 }
 0xa78   :  { %v1405_v47 = vpop.xlane.xlu2 %1404  ;;  %v1408_v56 = vpop.xlane.xlu1 %1407 }
 0xa79   :  { %v1411_v49 = vsub.f32 %v1395_v19, %v1405_v47  ;;  %v1412_v57 = vsub.f32 %v1396_v14, %v1408_v56 }
 0xa7b   :  { %v2345_v52 = vpop.eup %1774  ;;  %v1417_v9 = vmul.f32 1.442695, %v1411_v49  ;;  %v1419_v61 = vmul.f32 1.442695, %v1412_v57 }
 0xa7c   :  { %v2347_v0 = vpop.eup %1776  ;;  %1255 = vrot.lane.b32.xlu2 %v2345_v52, %s1886_s2 }
 0xa7d   :  { %1778 = vpow2.f32 %v1417_v9  ;;  %1257 = vrot.lane.b32.xlu1 %v2347_v0, %s1886_s2 }
 0xa7e   :  { %1780 = vpow2.f32 %v1419_v61 }
 0xa83   :  { %v2353_v59 = vpop.eup %1778 }
 0xa84   :  { %v2355_v58 = vpop.eup %1780  ;;  %1429 = vrot.lane.b32.xlu2 %v2353_v59, %s1886_s2 }
 0xa85   :  { %1431 = vrot.lane.b32.xlu1 %v2355_v58, %s1886_s2 }
 0xac6   :  { %v1252_v55 = vpop.permute.xlu2 %1251  ;;  %v1254_v62 = vpop.permute.xlu1 %1253 }
 0xac7   :  { %v1263_v45 = vsel %vm136_vm0, %v1252_v55, 0.0  ;;  %v1266_v51 = vsel %vm136_vm0, %v1254_v62, 0.0  ;;  %v1566_v62 = vmul.f32 2.0, %v2257_v60 }
 0xac8   :  { %1264 = vadd.xlane.f32.xlu2 %v1263_v45  ;;  %1267 = vadd.xlane.f32.xlu1 %v1266_v51 }
 0xace   :  { %v1426_v15 = vpop.permute.xlu2 %1425 }
 0xacf   :  { %v1437_v11 = vsel %vm136_vm0, %v1426_v15, 0.0 }
 0xad0   :  { %1438 = vadd.xlane.f32.xlu0 %v1437_v11 }
 0xad6   :  { %v1256_v63 = vpop.permute.xlu2 %1255 }
 0xad7   :  { %v1269_v3 = vsel %vm136_vm0, %v1256_v63, 0.0 }
 0xad8   :  { %1270 = vadd.xlane.f32.xlu2 %v1269_v3 }
 0xade   :  { %v1430_v54 = vpop.permute.xlu2 %1429 }
 0xadf   :  { %v1443_v4 = vsel %vm136_vm0, %v1430_v54, 0.0 }
 0xae0   :  { %1444 = vadd.xlane.f32.xlu1 %v1443_v4 }
 0xae7   :  { %v1428_v16 = vpop.permute.xlu1 %1427 }
 0xae8   :  { %v1440_v7 = vsel %vm136_vm0, %v1428_v16, 0.0 }
 0xae9   :  { %1441 = vadd.xlane.f32.xlu0 %v1440_v7 }
 0xaef   :  { %v1258_v10 = vpop.permute.xlu1 %1257 }
 0xaf0   :  { %v1272_v13 = vsel %vm136_vm0, %v1258_v10, 0.0 }
 0xaf7   :  { %v1432_v18 = vpop.permute.xlu1 %1431 }
 0xaf8   :  { %v1446_v6 = vsel %vm136_vm0, %v1432_v18, 0.0 }
 0xaf9   :  { %1447 = vadd.xlane.f32.xlu2 %v1446_v6  ;;  %1465 = vrot.lane.b32.xlu1 %v2254_v53, %s1896_s10 }
 0xafd   :  { %1467 = vrot.lane.b32.xlu0 %v2251_v48, %s1896_s10 }
 0xb01   :  { %1529 = vrot.lane.b32.xlu1 %v2257_v60, %s1904_s15 }
 0xb09   :  { %1535 = vrot.lane.b32.xlu1 %v2272_v17, %s1904_s15 }
 0xb11   :  { %1307 = vrot.lane.b32.xlu1 %v2235_v39, %s1894_s8 }
 0xb19   :  { %1473 = vrot.lane.b32.xlu1 %v2231_v38, %s1887_s30 }
 0xb27   :  { %1273 = vadd.xlane.f32.xlu0 %v1272_v13 }
 0xb3b   :  { %v1265_v53 = vpop.xlane.xlu2 %1264  ;;  %v1268_v5 = vpop.xlane.xlu1 %1267 }
 0xb3c   :  { %1782 = vrcp.f32 %v1265_v53 }
 0xb3d   :  { %1784 = vrcp.f32 %v1268_v5 }
 0xb42   :  { %v1783_v48 = vpop.eup %1782 }
 0xb43   :  { %v1785_v14 = vpop.eup %1784  ;;  %v1279_v8 = vmul.f32 %v1783_v48, %v2333_v32  ;;  %v1439_v22 = vpop.xlane.xlu0 %1438 }
 0xb44   :  { %v1280_v19 = vmul.f32 %v1785_v14, %v2329_v12  ;;  %1786 = vrcp.f32 %v1439_v22 }
 0xb46   :  { %v1283_v21 = vpack.c.bf16 %v1280_v19, %v1279_v8 }
 0xb48   :  { %1287 = vrot.lane.b32.xlu2 %v1283_v21, %s1886_s2 }
 0xb4a   :  { %v1787_v23 = vpop.eup %1786 }
 0xb4b   :  { %v1271_v2 = vpop.xlane.xlu2 %1270  ;;  %v1453_v25 = vmul.f32 %v1787_v23, %v2337_v43 }
 0xb53   :  { %v1445_v28 = vpop.xlane.xlu1 %1444 }
 0xb5c   :  { %v1442_v24 = vpop.xlane.xlu0 %1441 }
 0xb5d   :  { %1788 = vrcp.f32 %v1442_v24 }
 0xb5e   :  { %1790 = vrcp.f32 %v1445_v28 }
 0xb63   :  { %v1789_v26 = vpop.eup %1788 }
 0xb64   :  { %v1454_v27 = vmul.f32 %v1789_v26, %v2339_v42  ;;  %v1791_v31 = vpop.eup %1790 }
 0xb65   :  { %v1455_v34 = vmul.f32 %v1791_v31, %v2353_v59 }
 0xb66   :  { %v1457_v1 = vpack.c.bf16 %v1454_v27, %v1453_v25 }
 0xb68   :  { %1461 = vrot.lane.b32.xlu0 %v1457_v1, %s1886_s2 }
 0xb6b   :  { %v1466_v33 = vpop.permute.xlu1 %1465 }
 0xb6c   :  { %v1448_v12 = vpop.xlane.xlu2 %1447 }
 0xb6d   :  { %1792 = vrcp.f32 %v1448_v12 }
 0xb6e   :  { %1794 = vrcp.f32 %v1271_v2 }
 0xb6f   :  { %v1468_v30 = vpop.permute.xlu0 %1467 }
 0xb70   :  { %1495 = vmatpush.bf16.msrb.mxu3 %v1468_v30 }
 0xb73   :  { %v1793_v32 = vpop.eup %1792  ;;  %v1530_v56 = vpop.permute.xlu1 %1529 }
 0xb74   :  { %v1456_v29 = vmul.f32 %v1793_v32, %v2355_v58  ;;  %1496 = vmatpush.bf16.msrb.mxu3 %v1466_v33  ;;  %v1795_v40 = vpop.eup %1794  ;;  %v1541_v49 = vadd.f32 %v1530_v56, %v2257_v60 }
 0xb75   :  { %v1281_v46 = vmul.f32 %v1795_v40, %v2345_v52 }
 0xb76   :  { %v1458_v35 = vpack.c.bf16 %v1456_v29, %v1455_v34 }
 0xb78   :  { %1463 = vrot.lane.b32.xlu2 %v1458_v35, %s1886_s2 }
 0xb7b   :  { %v1536_v57 = vpop.permute.xlu1 %1535 }
 0xb7c   :  { %v1544_v9 = vadd.f32 %v1536_v57, %v2272_v17 }
 0xb80   :  { %1533 = vrot.lane.b32.xlu2 %v2265_v50, %s1904_s15 }
 0xb83   :  { %v1308_v51 = vpop.permute.xlu1 %1307 }
 0xb88   :  { %1305 = vrot.lane.b32.xlu2 %v2231_v38, %s1894_s8  ;;  %v1512_v38 = vld [vmem:[#allocation3 + $0x8] ss:$0 sm:$0xff] }
 0xb89   :  { %1518 = vrot.lane.b32.xlu1 %v1512_v38, %s1895_s9 }
 0xb8b   :  { %v1474_v3 = vpop.permute.xlu1 %1473 }
 0xb90   :  { %1471 = vrot.lane.b32.xlu2 %v2227_v37, %s1887_s30 }
 0xb98   :  { %1477 = vrot.lane.b32.xlu2 %v2241_v41, %s1887_s30 }
 0xb9a   :  { %v1274_v36 = vpop.xlane.xlu0 %1273 }
 0xb9b   :  { %1796 = vrcp.f32 %v1274_v36 }
 0xba1   :  { %v1797_v43 = vpop.eup %1796 }
 0xba2   :  { %v1288_v44 = vpop.permute.xlu2 %1287  ;;  %v1282_v42 = vmul.f32 %v1797_v43, %v2347_v0 }
 0xba3   :  { %1629 = vmatmul.msk.bf16.vlgmr.msrb.gmra.mxu2 %vm136_vm0, %v1288_v44 }
 0xba4   :  { %v1284_v47 = vpack.c.bf16 %v1282_v42, %v1281_v46 }
 0xba6   :  { %1289 = vrot.lane.b32.xlu0 %v1284_v47, %s1886_s2 }
 0xbae   :  { %1531 = vrot.lane.b32.xlu0 %v2262_v20, %s1904_s15 }
 0xbb6   :  { %1303 = vrot.lane.b32.xlu0 %v2227_v37, %s1894_s8 }
 0xbbe   :  { %1309 = vrot.lane.b32.xlu0 %v2241_v41, %s1894_s8  ;;  %v1568_v41 = vmul.f32 2.0, %v2265_v50 }
 0xbc6   :  { %1475 = vrot.lane.b32.xlu0 %v2235_v39, %s1887_s30  ;;  %v1567_v39 = vmul.f32 2.0, %v2262_v20 }
 0xbce   :  { %1549 = vrot.lane.b32.xlu0 %v1541_v49, %s1897_s11 }
 0xbd2   :  { %v1464_v52 = vpop.permute.xlu2 %1463 }
 0xbd6   :  { %1555 = vrot.lane.b32.xlu0 %v1544_v9, %s1897_s11 }
 0xbda   :  { %v1462_v61 = vpop.permute.xlu0 %1461  ;;  %v1534_v0 = vpop.permute.xlu2 %1533 }
 0xbdb   :  { %v1543_v37 = vadd.f32 %v1534_v0, %v2265_v50  ;;  %1631 = vmatmul.msk.bf16.vlgmr.msrb.gmra.mxu3 %vm136_vm0, %v1462_v61  ;;  %v1569_v50 = vmul.f32 2.0, %v2272_v17 }
 0xbdd   :  { %1553 = vrot.lane.b32.xlu1 %v1543_v37, %s1897_s11 }
 0xbde   :  { %1578 = vrot.lane.b32.xlu0 %v1568_v41, %s1905_s16 }
 0xbe2   :  { %v1306_v11 = vpop.permute.xlu2 %1305 }
 0xbe5   :  { %1576 = vrot.lane.b32.xlu1 %v1567_v39, %s1905_s16 }
 0xbea   :  { %v1472_v4 = vpop.permute.xlu2 %1471 }
 0xbeb   :  { %1632 = vmatmul.msk.bf16.gmra.mxu3 %vm136_vm0, %v1464_v52 }
 0xbf2   :  { %v1478_v22 = vpop.permute.xlu2 %1477 }
 0xbfb   :  { %v1519_v13 = vpop.permute.xlu1 %1518 }
 0xc18   :  { %v1290_v59 = vpop.permute.xlu0 %1289 }
 0xc19   :  { %1630 = vmatmul.msk.bf16.gmra.mxu2 %vm136_vm0, %v1290_v59  ;;  %vm1561_vm0 = vcmask 80960  }
 0xc20   :  { %v1532_v58 = vpop.permute.xlu0 %1531 }
 0xc21   :  { %v1542_v55 = vadd.f32 %v1532_v58, %v2262_v20 }
 0xc23   :  { %1551 = vrot.lane.b32.xlu2 %v1542_v55, %s1897_s11 }
 0xc26   :  { %v1330_v63 = vpop.f32.mrf.mxu2 }
 0xc28   :  { %v1304_v45 = vpop.permute.xlu0 %1303 }
 0xc29   :  { %v1331_v7 = vadd.f32 %v1330_v63, %v1304_v45 }
 0xc2b   :  { %1574 = vrot.lane.b32.xlu2 %v1566_v62, %s1905_s16 }
 0xc2e   :  { %v1332_v6 = vpop.f32.mrf.mxu2 }
 0xc2f   :  { %v1333_v17 = vadd.f32 %v1332_v6, %v1306_v11 }
 0xc30   :  { %v1310_v15 = vpop.permute.xlu0 %1309 }
 0xc33   :  { %1580 = vrot.lane.b32.xlu2 %v1569_v50, %s1905_s16 }
 0xc38   :  { %v1476_v54 = vpop.permute.xlu0 %1475 }
 0xc40   :  { %v1550_v5 = vpop.permute.xlu0 %1549 }
 0xc48   :  { %v1556_v25 = vpop.permute.xlu0 %1555 }
 0xc4f   :  { %v1554_v21 = vpop.permute.xlu1 %1553 }
 0xc50   :  { %v1579_v35 = vpop.permute.xlu0 %1578 }
 0xc57   :  { %v1577_v23 = vpop.permute.xlu1 %1576 }
 0xc5e   :  { %v1498_v16 = vpop.f32.mrf.mxu3 }
 0xc5f   :  { %v1499_v10 = vadd.f32 %v1498_v16, %v1472_v4 }
 0xc61   :  { %v1508_v20 = vadd.f32 %v1499_v10, %v1331_v7 }
 0xc63   :  { %v1513_v18 = vmul.f32 0.5, %v1508_v20 }
 0xc65   :  { %v1521_v60 = vadd.f32 %v1519_v13, %v1513_v18 }
 0xc66   :  { %v1500_v53 = vpop.f32.mrf.mxu3 }
 0xc67   :  { %1525 = vst.msk [vmem:[%s2477_s3] sm:$0xff] %vm619_vm9, %v1521_v60  ;;  %v1501_v48 = vadd.f32 %v1500_v53, %v1474_v3 }
 0xc68   :  { %1562 = vst.msk [vmem:[%s2477_s3] sm:$0xff] %vm1561_vm0, %v1550_v5 }
 0xc69   :  { %v1509_v14 = vadd.f32 %v1501_v48, %v1333_v17 }
 0xc6b   :  { %v1514_v8 = vmul.f32 0.5, %v1509_v14 }
 0xc6d   :  { %v1522_v19 = vadd.f32 %v1519_v13, %v1514_v8 }
 0xc6e   :  { %v1503_v2 = vpop.f32.mrf.mxu3 }
 0xc6f   :  { %1526 = vst.msk [vmem:[%s2477_s3 + $0x8] sm:$0xff] %vm619_vm9, %v1522_v19  ;;  %v1504_v1 = vadd.f32 %v1503_v2, %v1476_v54 }
 0xc76   :  { %v1505_v31 = vpop.f32.mrf.mxu3 }
 0xc77   :  { %v1506_v34 = vadd.f32 %v1505_v31, %v1478_v22 }
 0xc7d   :  { %v1552_v24 = vpop.permute.xlu2 %1551 }
 0xc7e   :  { %1563 = vst.msk [vmem:[%s2477_s3 + $0x8] sm:$0xff] %vm1561_vm0, %v1552_v24 }
 0xc7f   :  { %1588 = vst.msk [vmem:[%s2477_s3 + $0x8] sm:$0xff] %vm1586_vm1, %v1577_v23 }
 0xc85   :  { %v1575_v26 = vpop.permute.xlu2 %1574 }
 0xc86   :  { %1587 = vst.msk [vmem:[%s2477_s3] sm:$0xff] %vm1586_vm1, %v1575_v26 }
 0xc8d   :  { %v1581_v44 = vpop.permute.xlu2 %1580 }
 0xc9c   :  { %v1335_v27 = vpop.f32.mrf.mxu2 }
 0xc9d   :  { %v1336_v28 = vadd.f32 %v1335_v27, %v1308_v51 }
 0xc9f   :  { %v1510_v12 = vadd.f32 %v1504_v1, %v1336_v28 }
 0xca1   :  { %v1515_v30 = vmul.f32 0.5, %v1510_v12 }
 0xca3   :  { %v1523_v32 = vadd.f32 %v1519_v13, %v1515_v30 }
 0xca4   :  { %v1337_v33 = vpop.f32.mrf.mxu2 }
 0xca5   :  { %1527 = vst.msk [vmem:[%s2477_s3 + $0x10] sm:$0xff] %vm619_vm9, %v1523_v32  ;;  %v1338_v29 = vadd.f32 %v1337_v33, %v1310_v15 }
 0xca6   :  { %1564 = vst.msk [vmem:[%s2477_s3 + $0x10] sm:$0xff] %vm1561_vm0, %v1554_v21 }
 0xca7   :  { %1589 = vst.msk [vmem:[%s2477_s3 + $0x10] sm:$0xff] %vm1586_vm1, %v1579_v35  ;;  %v1511_v36 = vadd.f32 %v1506_v34, %v1338_v29 }
 0xca9   :  { %v1516_v40 = vmul.f32 0.5, %v1511_v36 }
 0xcab   :  { %v1524_v43 = vadd.f32 %v1519_v13, %v1516_v40 }
 0xcad   :  { %1528 = vst.msk [vmem:[%s2477_s3 + $0x18] sm:$0xff] %vm619_vm9, %v1524_v43 }
 0xcae   :  { %1565 = vst.msk [vmem:[%s2477_s3 + $0x18] sm:$0xff] %vm1561_vm0, %v1556_v25 }
 0xcaf   :  { %1590 = vst.msk [vmem:[%s2477_s3 + $0x18] sm:$0xff] %vm1586_vm1, %v1581_v44 }
 0xcb0   :  { %1595 = vsyncpa [#allocation4], 1 }
 0xcb1   :  { %1596 = vsyncpa [#allocation6], 1 }

</bundles_post_ra>
